<compile_context>
chip_gen: v7x
topology: tpu7x:2x2x1
jax: 0.10.0
libtpu: 0.0.40
codegen_flags: <defaults>
</compile_context>

<pallas_src>
import jax
import jax.numpy as jnp
import numpy as np
from jax import lax
from jax.experimental import pallas as pl
from jax.experimental.pallas import tpu as pltpu

EPS = 1e-5
MATMUL_DTYPE = jnp.bfloat16   # MXU operand dtype; accumulation stays f32.


def _make_banded_weights(w_hwio, W):
    """Fold the width taps and the W zero-padding of a 3x3 conv into a block-banded
    matrix, so one conv row-slab becomes a single (W*Cin) x (W*Cout) matmul per kh.

    band[kh, wi*Cin + ci, wo*Cout + co] = w[kh, wi - wo + 1, ci, co]  (0 elsewhere)
    Returns (KH, W*Cin, W*Cout).
    """
    KH, KW, Cin, Cout = w_hwio.shape
    wi = jnp.arange(W)[:, None]            # input column
    wo = jnp.arange(W)[None, :]            # output column
    kw = wi - wo + 1                       # tap index (padding = 1)
    valid = (kw >= 0) & (kw < KW)
    kw_safe = jnp.clip(kw, 0, KW - 1)
    band = w_hwio[:, kw_safe]              # (KH, wi, wo, Cin, Cout)
    band = jnp.where(valid[None, :, :, None, None], band, 0.0)
    band = jnp.transpose(band, (0, 1, 3, 2, 4))  # (KH, wi, Cin, wo, Cout)
    return band.reshape(KH, W * Cin, W * Cout)


def _pack_band(band, pk):
    """Block-diagonal replication of the band for `pk` lane-packed images."""
    if pk == 1:
        return band
    KH, wc, _ = band.shape
    L = pk * wc
    out = jnp.zeros((KH, L, L), band.dtype)
    for s in range(pk):
        out = out.at[:, s * wc:(s + 1) * wc, s * wc:(s + 1) * wc].set(band)
    return out


def _residual_block_impl(x_nchw, params):
    """params = (g1, b1, w1_oihw, g2, b2, w2_oihw, bias2); x in NCHW (PyTorch)."""
    g1, b1, w1_oihw, g2, b2, w2_oihw, bias2 = params
    N, C, H, W = x_nchw.shape
    Cout = w1_oihw.shape[0]
    assert Cout == C, "residual add requires in_channels == out_channels"

    PK = 2 if N % 2 == 0 else 1            # images packed per grid step along lanes
    P = N // PK
    L = PK * W * C                         # lane width of one activation slab
    # The in-kernel per-channel reduction uses a roll-add butterfly over lanes.
    assert (L // C) & (L // C - 1) == 0, "PK*W must be a power of two"
    # TODO(synk): for non-power-of-two PK*W, replace the roll butterfly with an exact
    #             0/1 channel-sum matmul; not needed at these shapes.

    inv_count = 1.0 / float(N * H * W)     # BatchNorm per-channel element count

    # ---- Lane-dense, pair-packed activation slabs: (P, H, L) with L = PK*W*C ----
    x_nhwc = jnp.transpose(x_nchw, (0, 2, 3, 1)).astype(jnp.float32)
    x2 = x_nhwc.reshape(P, PK, H, W * C).transpose(0, 2, 1, 3).reshape(P, H, L)

    # ---- Banded (and pair-block-diagonal) conv weights, kh concatenated along K ----
    w1_hwio = jnp.transpose(w1_oihw, (2, 3, 1, 0)).astype(jnp.float32)
    w2_hwio = jnp.transpose(w2_oihw, (2, 3, 1, 0)).astype(jnp.float32)
    band1 = _pack_band(_make_banded_weights(w1_hwio, W), PK)
    band2 = _pack_band(_make_banded_weights(w2_hwio, W), PK)
    band1 = band1.reshape(3 * L, L).astype(MATMUL_DTYPE)     # (3L, L)
    band2 = band2.reshape(3 * L, L).astype(MATMUL_DTYPE)

    # ---- Per-channel affine params / bias, tiled to the lane layout: (5, L) ----
    def lane_tile(v):
        return jnp.tile(v.astype(jnp.float32), PK * W)
    affine = jnp.stack([lane_tile(g1), lane_tile(b1),
                        lane_tile(g2), lane_tile(b2), lane_tile(bias2)], axis=0)

    def kernel(x_ref, aff_ref, band1_ref, band2_ref, o_ref,
               h_ref, bn1_ref, bn2_ref, pad_ref):
        ph = pl.program_id(0)   # phase: 0 = BN1 stats, 1 = conv1, 2 = conv2
        p = pl.program_id(1)    # image-pair index

        # One-time init: zero stat accumulators and the two padding halo rows.
        @pl.when((ph == 0) & (p == 0))
        def _init():
            bn1_ref[...] = jnp.zeros_like(bn1_ref)
            bn2_ref[...] = jnp.zeros_like(bn2_ref)
            zero_row = jnp.zeros((1, L), pad_ref.dtype)
            pad_ref[0:1, :] = zero_row
            pad_ref[H + 1:H + 2, :] = zero_row

        def accumulate(stat_ref, v):
            stat_ref[0:1, :] += jnp.sum(v, axis=0, keepdims=True)
            stat_ref[1:2, :] += jnp.sum(v * v, axis=0, keepdims=True)

        def finalize(stat_ref, g_row, b_row):
            # Roll-add butterfly: every lane ends up holding the sum over all lanes
            # with the same channel (lane % C), i.e. the per-channel total broadcast
            # back to lane layout.  Direction-independent, runs on the XLU slot.
            acc = stat_ref[0:2, :]                       # [sum; sumsq]  (2, L) f32
            sh = C
            while sh < L:
                acc = acc + pltpu.roll(acc, shift=sh, axis=1)
                sh *= 2
            mean = acc[0:1, :] * inv_count
            var = jnp.maximum(acc[1:2, :] * inv_count - mean * mean, 0.0)
            scale = g_row * lax.rsqrt(var + EPS)         # EUP, free slot
            stat_ref[2:3, :] = scale
            stat_ref[3:4, :] = b_row - mean * scale

        def conv3x3(a_f32, band_ref):
            # Single dot per conv: the 3 kh taps are concatenated along K (width taps
            # and W-padding already live inside the banded weights).
            pad_ref[1:H + 1, :] = a_f32.astype(pad_ref.dtype)
            lhs = jnp.concatenate(
                [pad_ref[0:H, :], pad_ref[1:H + 1, :], pad_ref[2:H + 2, :]], axis=1)
            return jnp.dot(lhs, band_ref[...], preferred_element_type=jnp.float32)

        # Phase 0: BN1 partial statistics of x (per-lane sum / sum of squares).
        @pl.when(ph == 0)
        def _phase0():
            accumulate(bn1_ref, x_ref[...])

        # Phase boundary 0 -> 1: finalize BN1 scale/shift in-kernel.
        @pl.when((ph == 1) & (p == 0))
        def _finalize_bn1():
            finalize(bn1_ref, aff_ref[0:1, :], aff_ref[1:2, :])

        # Phase 1: BN1 -> ReLU -> conv1; h stays resident in VMEM; BN2 partial stats.
        @pl.when(ph == 1)
        def _phase1():
            a = jnp.maximum(x_ref[...] * bn1_ref[2:3, :] + bn1_ref[3:4, :], 0.0)
            y = conv3x3(a, band1_ref)          # (H, L) f32
            h_ref[p] = y
            accumulate(bn2_ref, y)

        # Phase boundary 1 -> 2: finalize BN2 scale/shift in-kernel.
        @pl.when((ph == 2) & (p == 0))
        def _finalize_bn2():
            finalize(bn2_ref, aff_ref[2:3, :], aff_ref[3:4, :])

        # Phase 2: BN2 -> ReLU -> conv2 + bias + residual add.  (Output is only
        # produced here; earlier-phase writebacks of the same block are overwritten.)
        @pl.when(ph == 2)
        def _phase2():
            a = jnp.maximum(h_ref[p] * bn2_ref[2:3, :] + bn2_ref[3:4, :], 0.0)
            y = conv3x3(a, band2_ref)
            o_ref[...] = (y + aff_ref[4:5, :] + x_ref[...]).astype(o_ref.dtype)

    out2 = pl.pallas_call(
        kernel,
        grid=(3, P),
        in_specs=[
            pl.BlockSpec((None, H, L), lambda ph, p: (p, 0, 0)),   # x slab
            pl.BlockSpec((5, L), lambda ph, p: (0, 0)),            # g1,b1,g2,b2,bias
            pl.BlockSpec((3 * L, L), lambda ph, p: (0, 0)),        # banded conv1 w
            pl.BlockSpec((3 * L, L), lambda ph, p: (0, 0)),        # banded conv2 w
        ],
        out_specs=pl.BlockSpec((None, H, L), lambda ph, p: (p, 0, 0)),
        out_shape=jax.ShapeDtypeStruct((P, H, L), x_nchw.dtype),
        scratch_shapes=[
            pltpu.VMEM((P, H, L), jnp.float32),    # conv1 output h, resident (8 KB here);
                                                   # spill to an HBM output for large N*H*L
            pltpu.VMEM((4, L), jnp.float32),       # BN1: [sum, sumsq, scale, shift]
            pltpu.VMEM((4, L), jnp.float32),       # BN2: [sum, sumsq, scale, shift]
            pltpu.VMEM((H + 2, L), MATMUL_DTYPE),  # zero-padded bf16 matmul LHS staging
        ],
        compiler_params=pltpu.CompilerParams(
            # Batch stats are a cross-batch reduction carried in scratch, so the pair
            # axis must stay sequential ("arbitrary"); see header comment for the
            # large-N / multi-TensorCore variant.
            dimension_semantics=("arbitrary", "arbitrary"),
            vmem_limit_bytes=32 * 1024 * 1024),
        cost_estimate=pl.CostEstimate(
            flops=2 * 2 * P * H * 3 * L * L,
            transcendentals=0,
            bytes_accessed=4 * (4 * P * H * L + 5 * L) + 2 * (2 * 3 * L * L)),
    )(x2, affine, band1, band2)

    out_nhwc = out2.reshape(P, H, PK, W * C).transpose(0, 2, 1, 3).reshape(N, H, W, C)
    return jnp.transpose(out_nhwc, (0, 3, 1, 2))


residual_block = jax.jit(_residual_block_impl)


def make_params(key, cin, cout):
    ks = jax.random.split(key, 8)
    g1 = 1.0 + 0.1 * jax.random.normal(ks[0], (cin,), jnp.float32)
    b1 = 0.1 * jax.random.normal(ks[1], (cin,), jnp.float32)
    g2 = 1.0 + 0.1 * jax.random.normal(ks[2], (cout,), jnp.float32)
    b2 = 0.1 * jax.random.normal(ks[3], (cout,), jnp.float32)
    # weight_norm: w = g * v / ||v|| (norm over in_ch, kh, kw per out channel)
    v1 = 0.1 * jax.random.normal(ks[4], (cout, cin, 3, 3), jnp.float32)
    gn1 = 1.0 + 0.1 * jax.random.normal(ks[5], (cout,), jnp.float32)
    w1 = gn1[:, None, None, None] * v1 / jnp.sqrt(
        jnp.sum(v1 ** 2, axis=(1, 2, 3), keepdims=True))
    v2 = 0.1 * jax.random.normal(ks[6], (cout, cout, 3, 3), jnp.float32)
    gn2 = 1.0 + 0.1 * jax.random.normal(ks[7], (cout,), jnp.float32)
    w2 = gn2[:, None, None, None] * v2 / jnp.sqrt(
        jnp.sum(v2 ** 2, axis=(1, 2, 3), keepdims=True))
    bias2 = 0.05 * jnp.arange(cout, dtype=jnp.float32)
    return (g1, b1, w1, g2, b2, w2, bias2)


def reference_forward(x, params):
    """Pure-JAX f32 reference matching the PyTorch module (NCHW, training-mode BN)."""
    g1, b1, w1, g2, b2, w2, bias2 = params

    def bn_relu(t, g, b):
        m = jnp.mean(t, axis=(0, 2, 3), keepdims=True)
        v = jnp.mean((t - m) ** 2, axis=(0, 2, 3), keepdims=True)
        h = (t - m) * lax.rsqrt(v + EPS) * g.reshape(1, -1, 1, 1) + b.reshape(1, -1, 1, 1)
        return jnp.maximum(h, 0.0)

    def conv(t, w):
        return lax.conv_general_dilated(
            t, w, window_strides=(1, 1), padding="SAME",
            dimension_numbers=("NCHW", "OIHW", "NCHW"))

    h = conv(bn_relu(x, g1, b1), w1)
    h = conv(bn_relu(h, g2, b2), w2) + bias2.reshape(1, -1, 1, 1)
    return h + x


if __name__ == "__main__":
    N, C, H, W = 2, 4, 16, 16          # in_channels == out_channels == 4
    key = jax.random.PRNGKey(0)
    kx, kp = jax.random.split(key)
    x = jax.random.normal(kx, (N, C, H, W), jnp.float32)
    params = make_params(kp, C, C)

    out = jax.block_until_ready(residual_block(x, params))
    ref = jax.block_until_ready(reference_forward(x, params))

    # Tolerance loosened vs. the pure-f32 version because conv operands are bf16 on
    # the MXU (accumulation in f32); structural errors would be orders larger.
    if not np.allclose(np.asarray(out), np.asarray(ref), rtol=3e-2, atol=3e-2):
        raise AssertionError("Pallas kernel output does not match reference")
    print("KERNEL_OK")
</pallas_src>

<mosaic_0001>
module attributes {stable_mosaic.version = 11 : i64} {
  func.func @kernel(%arg0: i32, %arg1: i32, %arg2: memref<1x16x128xf32, #tpu.memory_space<vmem>>, %arg3: memref<5x128xf32, #tpu.memory_space<vmem>>, %arg4: memref<384x128xbf16, #tpu.memory_space<vmem>>, %arg5: memref<384x128xbf16, #tpu.memory_space<vmem>>, %arg6: memref<1x16x128xf32, #tpu.memory_space<vmem>>, %arg7: memref<1x16x128xf32, #tpu.memory_space<vmem>>, %arg8: memref<4x128xf32, #tpu.memory_space<vmem>>, %arg9: memref<4x128xf32, #tpu.memory_space<vmem>>, %arg10: memref<18x128xbf16, #tpu.memory_space<vmem>>) attributes {dimension_semantics = [#tpu.dimension_semantics<arbitrary>, #tpu.dimension_semantics<arbitrary>], iteration_bounds = array<i64: 3, 1>, scalar_prefetch = 0 : i64, scratch_operands = 4 : i64, tpu.core_type = #tpu.core_type<tc>, window_params = [{transform_indices = @transform_0, window_bounds = array<i64: 1, 16, 128>}, {pipeline_mode = #tpu.pipeline_mode<synchronous>, transform_indices = @transform_1, window_bounds = array<i64: 5, 128>}, {pipeline_mode = #tpu.pipeline_mode<synchronous>, transform_indices = @transform_2, window_bounds = array<i64: 384, 128>}, {pipeline_mode = #tpu.pipeline_mode<synchronous>, transform_indices = @transform_3, window_bounds = array<i64: 384, 128>}, {transform_indices = @transform_4, window_bounds = array<i64: 1, 16, 128>}]} {
    %c0_i32 = arith.constant 0 : i32
    %0 = arith.cmpi eq, %arg0, %c0_i32 : i32
    %c0_i32_0 = arith.constant 0 : i32
    %1 = arith.cmpi eq, %arg1, %c0_i32_0 : i32
    %2 = arith.andi %0, %1 : i1
    %3 = arith.extui %2 : i1 to i32
    %c0_i32_1 = arith.constant 0 : i32
    %4 = arith.cmpi ne, %3, %c0_i32_1 : i32
    scf.if %4 {
      %cst = arith.constant 0.000000e+00 : f32
      %24 = vector.broadcast %cst : f32 to vector<4x128xf32>
      %c0 = arith.constant 0 : index
      %c0_12 = arith.constant 0 : index
      %25 = vector.load %arg8[%c0, %c0_12] : memref<4x128xf32, #tpu.memory_space<vmem>>, vector<4x128xf32>
      tpu.vector_store %arg8[%c0, %c0_12], %24 {strides = array<i32>} : memref<4x128xf32, #tpu.memory_space<vmem>>, vector<4x128xf32>,
      %cst_13 = arith.constant 0.000000e+00 : f32
      %26 = vector.broadcast %cst_13 : f32 to vector<4x128xf32>
      %c0_14 = arith.constant 0 : index
      %c0_15 = arith.constant 0 : index
      %27 = vector.load %arg9[%c0_14, %c0_15] : memref<4x128xf32, #tpu.memory_space<vmem>>, vector<4x128xf32>
      tpu.vector_store %arg9[%c0_14, %c0_15], %26 {strides = array<i32>} : memref<4x128xf32, #tpu.memory_space<vmem>>, vector<4x128xf32>,
      %cst_16 = arith.constant 0.000000e+00 : bf16
      %28 = vector.broadcast %cst_16 : bf16 to vector<1x128xbf16>
      %c0_17 = arith.constant 0 : index
      %c0_18 = arith.constant 0 : index
      %29 = vector.load %arg10[%c0_17, %c0_18] : memref<18x128xbf16, #tpu.memory_space<vmem>>, vector<1x128xbf16>
      tpu.vector_store %arg10[%c0_17, %c0_18], %28 {strides = array<i32>} : memref<18x128xbf16, #tpu.memory_space<vmem>>, vector<1x128xbf16>,
      %c17 = arith.constant 17 : index
      %c0_19 = arith.constant 0 : index
      %30 = vector.load %arg10[%c17, %c0_19] : memref<18x128xbf16, #tpu.memory_space<vmem>>, vector<1x128xbf16>
      tpu.vector_store %arg10[%c17, %c0_19], %28 {strides = array<i32>} : memref<18x128xbf16, #tpu.memory_space<vmem>>, vector<1x128xbf16>,
    } else {
    }
    %c0_i32_2 = arith.constant 0 : i32
    %5 = arith.cmpi eq, %arg0, %c0_i32_2 : i32
    %6 = arith.extui %5 : i1 to i32
    %c0_i32_3 = arith.constant 0 : i32
    %7 = arith.cmpi ne, %6, %c0_i32_3 : i32
    scf.if %7 {
      %c0 = arith.constant 0 : index
      %c0_12 = arith.constant 0 : index
      %c0_13 = arith.constant 0 : index
      %24 = vector.load %arg2[%c0, %c0_12, %c0_13] : memref<1x16x128xf32, #tpu.memory_space<vmem>>, vector<1x16x128xf32>
      %25 = vector.shape_cast %24 : vector<1x16x128xf32> to vector<16x128xf32>
      %c0_14 = arith.constant 0 : index
      %c0_15 = arith.constant 0 : index
      %26 = vector.load %arg8[%c0_14, %c0_15] : memref<4x128xf32, #tpu.memory_space<vmem>>, vector<1x128xf32>
      %cst = arith.constant dense<0.000000e+00> : vector<128xf32>
      %27 = vector.multi_reduction <add>, %25, %cst [0] : vector<16x128xf32> to vector<128xf32>
      %28 = vector.shape_cast %27 : vector<128xf32> to vector<1x128xf32>
      %29 = arith.addf %26, %28 : vector<1x128xf32>
      %c0_16 = arith.constant 0 : index
      %c0_17 = arith.constant 0 : index
      %30 = vector.load %arg8[%c0_16, %c0_17] : memref<4x128xf32, #tpu.memory_space<vmem>>, vector<1x128xf32>
      tpu.vector_store %arg8[%c0_16, %c0_17], %29 {strides = array<i32>} : memref<4x128xf32, #tpu.memory_space<vmem>>, vector<1x128xf32>,
      %c1 = arith.constant 1 : index
      %c0_18 = arith.constant 0 : index
      %31 = vector.load %arg8[%c1, %c0_18] : memref<4x128xf32, #tpu.memory_space<vmem>>, vector<1x128xf32>
      %32 = arith.mulf %25, %25 : vector<16x128xf32>
      %cst_19 = arith.constant dense<0.000000e+00> : vector<128xf32>
      %33 = vector.multi_reduction <add>, %32, %cst_19 [0] : vector<16x128xf32> to vector<128xf32>
      %34 = vector.shape_cast %33 : vector<128xf32> to vector<1x128xf32>
      %35 = arith.addf %31, %34 : vector<1x128xf32>
      %c1_20 = arith.constant 1 : index
      %c0_21 = arith.constant 0 : index
      %36 = vector.load %arg8[%c1_20, %c0_21] : memref<4x128xf32, #tpu.memory_space<vmem>>, vector<1x128xf32>
      tpu.vector_store %arg8[%c1_20, %c0_21], %35 {strides = array<i32>} : memref<4x128xf32, #tpu.memory_space<vmem>>, vector<1x128xf32>,
    } else {
    }
    %c1_i32 = arith.constant 1 : i32
    %8 = arith.cmpi eq, %arg0, %c1_i32 : i32
    %c0_i32_4 = arith.constant 0 : i32
    %9 = arith.cmpi eq, %arg1, %c0_i32_4 : i32
    %10 = arith.andi %8, %9 : i1
    %11 = arith.extui %10 : i1 to i32
    %c0_i32_5 = arith.constant 0 : i32
    %12 = arith.cmpi ne, %11, %c0_i32_5 : i32
    scf.if %12 {
      %c0 = arith.constant 0 : index
      %c0_12 = arith.constant 0 : index
      %24 = vector.load %arg3[%c0, %c0_12] : memref<5x128xf32, #tpu.memory_space<vmem>>, vector<1x128xf32>
      %c1 = arith.constant 1 : index
      %c0_13 = arith.constant 0 : index
      %25 = vector.load %arg3[%c1, %c0_13] : memref<5x128xf32, #tpu.memory_space<vmem>>, vector<1x128xf32>
      %c0_14 = arith.constant 0 : index
      %c0_15 = arith.constant 0 : index
      %26 = vector.load %arg8[%c0_14, %c0_15] : memref<4x128xf32, #tpu.memory_space<vmem>>, vector<2x128xf32>
      %c4_i32 = arith.constant 4 : i32
      %27 = tpu.dynamic_rotate %26 by %c4_i32 dim 1 : vector<2x128xf32>, i32 -> vector<2x128xf32>
      %28 = arith.addf %26, %27 : vector<2x128xf32>
      %c8_i32 = arith.constant 8 : i32
      %29 = tpu.dynamic_rotate %28 by %c8_i32 dim 1 : vector<2x128xf32>, i32 -> vector<2x128xf32>
      %30 = arith.addf %28, %29 : vector<2x128xf32>
      %c16_i32 = arith.constant 16 : i32
      %31 = tpu.dynamic_rotate %30 by %c16_i32 dim 1 : vector<2x128xf32>, i32 -> vector<2x128xf32>
      %32 = arith.addf %30, %31 : vector<2x128xf32>
      %c32_i32 = arith.constant 32 : i32
      %33 = tpu.dynamic_rotate %32 by %c32_i32 dim 1 : vector<2x128xf32>, i32 -> vector<2x128xf32>
      %34 = arith.addf %32, %33 : vector<2x128xf32>
      %c64_i32 = arith.constant 64 : i32
      %35 = tpu.dynamic_rotate %34 by %c64_i32 dim 1 : vector<2x128xf32>, i32 -> vector<2x128xf32>
      %36 = arith.addf %34, %35 : vector<2x128xf32>
      %37 = vector.extract_strided_slice %36 {offsets = [0, 0], sizes = [1, 128], strides = [1, 1]} : vector<2x128xf32> to vector<1x128xf32>
      %cst = arith.constant 0.001953125 : f32
      %38 = vector.broadcast %cst : f32 to vector<1x128xf32>
      %39 = arith.mulf %37, %38 : vector<1x128xf32>
      %40 = vector.extract_strided_slice %36 {offsets = [1, 0], sizes = [1, 128], strides = [1, 1]} : vector<2x128xf32> to vector<1x128xf32>
      %cst_16 = arith.constant 0.001953125 : f32
      %41 = vector.broadcast %cst_16 : f32 to vector<1x128xf32>
      %42 = arith.mulf %40, %41 : vector<1x128xf32>
      %43 = arith.mulf %39, %39 : vector<1x128xf32>
      %44 = arith.subf %42, %43 : vector<1x128xf32>
      %cst_17 = arith.constant 0.000000e+00 : f32
      %45 = vector.broadcast %cst_17 : f32 to vector<1x128xf32>
      %46 = arith.maximumf %44, %45 : vector<1x128xf32>
      %cst_18 = arith.constant 9.99999974E-6 : f32
      %47 = vector.broadcast %cst_18 : f32 to vector<1x128xf32>
      %48 = arith.addf %46, %47 : vector<1x128xf32>
      %49 = math.rsqrt %48 : vector<1x128xf32>
      %50 = arith.mulf %24, %49 : vector<1x128xf32>
      %c2 = arith.constant 2 : index
      %c0_19 = arith.constant 0 : index
      %51 = vector.load %arg8[%c2, %c0_19] : memref<4x128xf32, #tpu.memory_space<vmem>>, vector<1x128xf32>
      tpu.vector_store %arg8[%c2, %c0_19], %50 {strides = array<i32>} : memref<4x128xf32, #tpu.memory_space<vmem>>, vector<1x128xf32>,
      %52 = arith.mulf %39, %50 : vector<1x128xf32>
      %53 = arith.subf %25, %52 : vector<1x128xf32>
      %c3 = arith.constant 3 : index
      %c0_20 = arith.constant 0 : index
      %54 = vector.load %arg8[%c3, %c0_20] : memref<4x128xf32, #tpu.memory_space<vmem>>, vector<1x128xf32>
      tpu.vector_store %arg8[%c3, %c0_20], %53 {strides = array<i32>} : memref<4x128xf32, #tpu.memory_space<vmem>>, vector<1x128xf32>,
    } else {
    }
    %c1_i32_6 = arith.constant 1 : i32
    %13 = arith.cmpi eq, %arg0, %c1_i32_6 : i32
    %14 = arith.extui %13 : i1 to i32
    %c0_i32_7 = arith.constant 0 : i32
    %15 = arith.cmpi ne, %14, %c0_i32_7 : i32
    scf.if %15 {
      %c0 = arith.constant 0 : index
      %c0_12 = arith.constant 0 : index
      %c0_13 = arith.constant 0 : index
      %24 = vector.load %arg2[%c0, %c0_12, %c0_13] : memref<1x16x128xf32, #tpu.memory_space<vmem>>, vector<1x16x128xf32>
      %25 = vector.shape_cast %24 : vector<1x16x128xf32> to vector<16x128xf32>
      %c2 = arith.constant 2 : index
      %c0_14 = arith.constant 0 : index
      %26 = vector.load %arg8[%c2, %c0_14] : memref<4x128xf32, #tpu.memory_space<vmem>>, vector<1x128xf32>
      %27 = vector.broadcast %26 : vector<1x128xf32> to vector<16x128xf32>
      %28 = arith.mulf %25, %27 : vector<16x128xf32>
      %c3 = arith.constant 3 : index
      %c0_15 = arith.constant 0 : index
      %29 = vector.load %arg8[%c3, %c0_15] : memref<4x128xf32, #tpu.memory_space<vmem>>, vector<1x128xf32>
      %30 = vector.broadcast %29 : vector<1x128xf32> to vector<16x128xf32>
      %31 = arith.addf %28, %30 : vector<16x128xf32>
      %cst = arith.constant 0.000000e+00 : f32
      %32 = vector.broadcast %cst : f32 to vector<16x128xf32>
      %33 = arith.maximumf %31, %32 : vector<16x128xf32>
      %34 = arith.truncf %33 : vector<16x128xf32> to vector<16x128xbf16>
      %c1 = arith.constant 1 : index
      %c0_16 = arith.constant 0 : index
      %35 = vector.load %arg10[%c1, %c0_16] : memref<18x128xbf16, #tpu.memory_space<vmem>>, vector<16x128xbf16>
      tpu.vector_store %arg10[%c1, %c0_16], %34 {strides = array<i32>} : memref<18x128xbf16, #tpu.memory_space<vmem>>, vector<16x128xbf16>,
      %c0_17 = arith.constant 0 : index
      %c0_18 = arith.constant 0 : index
      %36 = vector.load %arg10[%c0_17, %c0_18] : memref<18x128xbf16, #tpu.memory_space<vmem>>, vector<16x128xbf16>
      %c1_19 = arith.constant 1 : index
      %c0_20 = arith.constant 0 : index
      %37 = vector.load %arg10[%c1_19, %c0_20] : memref<18x128xbf16, #tpu.memory_space<vmem>>, vector<16x128xbf16>
      %c2_21 = arith.constant 2 : index
      %c0_22 = arith.constant 0 : index
      %38 = vector.load %arg10[%c2_21, %c0_22] : memref<18x128xbf16, #tpu.memory_space<vmem>>, vector<16x128xbf16>
      %39 = tpu.concatenate %36, %37, %38 in 1 : vector<16x128xbf16>, vector<16x128xbf16>, vector<16x128xbf16> -> vector<16x384xbf16>
      %c0_23 = arith.constant 0 : index
      %c0_24 = arith.constant 0 : index
      %40 = vector.load %arg4[%c0_23, %c0_24] : memref<384x128xbf16, #tpu.memory_space<vmem>>, vector<384x128xbf16>
      %cst_25 = arith.constant dense<0.000000e+00> : vector<16x128xf32>
      %41 = tpu.matmul %39, %40, %cst_25 {dimension_numbers = #tpu.dot_dimension_numbers<[1], [0], [0], [1], [0, 0, 1, 1], [], []>} : vector<16x384xbf16>, vector<384x128xbf16>, vector<16x128xf32> -> vector<16x128xf32>
      %42 = arith.index_cast %arg1 : i32 to index
      %c0_26 = arith.constant 0 : index
      %c0_27 = arith.constant 0 : index
      %43 = vector.load %arg7[%42, %c0_26, %c0_27] : memref<1x16x128xf32, #tpu.memory_space<vmem>>, vector<1x16x128xf32>
      %44 = vector.shape_cast %43 : vector<1x16x128xf32> to vector<16x128xf32>
      %45 = vector.shape_cast %41 : vector<16x128xf32> to vector<1x16x128xf32>
      tpu.vector_store %arg7[%42, %c0_26, %c0_27], %45 {strides = array<i32>} : memref<1x16x128xf32, #tpu.memory_space<vmem>>, vector<1x16x128xf32>,
      %c0_28 = arith.constant 0 : index
      %c0_29 = arith.constant 0 : index
      %46 = vector.load %arg9[%c0_28, %c0_29] : memref<4x128xf32, #tpu.memory_space<vmem>>, vector<1x128xf32>
      %cst_30 = arith.constant dense<0.000000e+00> : vector<128xf32>
      %47 = vector.multi_reduction <add>, %41, %cst_30 [0] : vector<16x128xf32> to vector<128xf32>
      %48 = vector.shape_cast %47 : vector<128xf32> to vector<1x128xf32>
      %49 = arith.addf %46, %48 : vector<1x128xf32>
      %c0_31 = arith.constant 0 : index
      %c0_32 = arith.constant 0 : index
      %50 = vector.load %arg9[%c0_31, %c0_32] : memref<4x128xf32, #tpu.memory_space<vmem>>, vector<1x128xf32>
      tpu.vector_store %arg9[%c0_31, %c0_32], %49 {strides = array<i32>} : memref<4x128xf32, #tpu.memory_space<vmem>>, vector<1x128xf32>,
      %c1_33 = arith.constant 1 : index
      %c0_34 = arith.constant 0 : index
      %51 = vector.load %arg9[%c1_33, %c0_34] : memref<4x128xf32, #tpu.memory_space<vmem>>, vector<1x128xf32>
      %52 = arith.mulf %41, %41 : vector<16x128xf32>
      %cst_35 = arith.constant dense<0.000000e+00> : vector<128xf32>
      %53 = vector.multi_reduction <add>, %52, %cst_35 [0] : vector<16x128xf32> to vector<128xf32>
      %54 = vector.shape_cast %53 : vector<128xf32> to vector<1x128xf32>
      %55 = arith.addf %51, %54 : vector<1x128xf32>
      %c1_36 = arith.constant 1 : index
      %c0_37 = arith.constant 0 : index
      %56 = vector.load %arg9[%c1_36, %c0_37] : memref<4x128xf32, #tpu.memory_space<vmem>>, vector<1x128xf32>
      tpu.vector_store %arg9[%c1_36, %c0_37], %55 {strides = array<i32>} : memref<4x128xf32, #tpu.memory_space<vmem>>, vector<1x128xf32>,
    } else {
    }
    %c2_i32 = arith.constant 2 : i32
    %16 = arith.cmpi eq, %arg0, %c2_i32 : i32
    %c0_i32_8 = arith.constant 0 : i32
    %17 = arith.cmpi eq, %arg1, %c0_i32_8 : i32
    %18 = arith.andi %16, %17 : i1
    %19 = arith.extui %18 : i1 to i32
    %c0_i32_9 = arith.constant 0 : i32
    %20 = arith.cmpi ne, %19, %c0_i32_9 : i32
    scf.if %20 {
      %c2 = arith.constant 2 : index
      %c0 = arith.constant 0 : index
      %24 = vector.load %arg3[%c2, %c0] : memref<5x128xf32, #tpu.memory_space<vmem>>, vector<1x128xf32>
      %c3 = arith.constant 3 : index
      %c0_12 = arith.constant 0 : index
      %25 = vector.load %arg3[%c3, %c0_12] : memref<5x128xf32, #tpu.memory_space<vmem>>, vector<1x128xf32>
      %c0_13 = arith.constant 0 : index
      %c0_14 = arith.constant 0 : index
      %26 = vector.load %arg9[%c0_13, %c0_14] : memref<4x128xf32, #tpu.memory_space<vmem>>, vector<2x128xf32>
      %c4_i32 = arith.constant 4 : i32
      %27 = tpu.dynamic_rotate %26 by %c4_i32 dim 1 : vector<2x128xf32>, i32 -> vector<2x128xf32>
      %28 = arith.addf %26, %27 : vector<2x128xf32>
      %c8_i32 = arith.constant 8 : i32
      %29 = tpu.dynamic_rotate %28 by %c8_i32 dim 1 : vector<2x128xf32>, i32 -> vector<2x128xf32>
      %30 = arith.addf %28, %29 : vector<2x128xf32>
      %c16_i32 = arith.constant 16 : i32
      %31 = tpu.dynamic_rotate %30 by %c16_i32 dim 1 : vector<2x128xf32>, i32 -> vector<2x128xf32>
      %32 = arith.addf %30, %31 : vector<2x128xf32>
      %c32_i32 = arith.constant 32 : i32
      %33 = tpu.dynamic_rotate %32 by %c32_i32 dim 1 : vector<2x128xf32>, i32 -> vector<2x128xf32>
      %34 = arith.addf %32, %33 : vector<2x128xf32>
      %c64_i32 = arith.constant 64 : i32
      %35 = tpu.dynamic_rotate %34 by %c64_i32 dim 1 : vector<2x128xf32>, i32 -> vector<2x128xf32>
      %36 = arith.addf %34, %35 : vector<2x128xf32>
      %37 = vector.extract_strided_slice %36 {offsets = [0, 0], sizes = [1, 128], strides = [1, 1]} : vector<2x128xf32> to vector<1x128xf32>
      %cst = arith.constant 0.001953125 : f32
      %38 = vector.broadcast %cst : f32 to vector<1x128xf32>
      %39 = arith.mulf %37, %38 : vector<1x128xf32>
      %40 = vector.extract_strided_slice %36 {offsets = [1, 0], sizes = [1, 128], strides = [1, 1]} : vector<2x128xf32> to vector<1x128xf32>
      %cst_15 = arith.constant 0.001953125 : f32
      %41 = vector.broadcast %cst_15 : f32 to vector<1x128xf32>
      %42 = arith.mulf %40, %41 : vector<1x128xf32>
      %43 = arith.mulf %39, %39 : vector<1x128xf32>
      %44 = arith.subf %42, %43 : vector<1x128xf32>
      %cst_16 = arith.constant 0.000000e+00 : f32
      %45 = vector.broadcast %cst_16 : f32 to vector<1x128xf32>
      %46 = arith.maximumf %44, %45 : vector<1x128xf32>
      %cst_17 = arith.constant 9.99999974E-6 : f32
      %47 = vector.broadcast %cst_17 : f32 to vector<1x128xf32>
      %48 = arith.addf %46, %47 : vector<1x128xf32>
      %49 = math.rsqrt %48 : vector<1x128xf32>
      %50 = arith.mulf %24, %49 : vector<1x128xf32>
      %c2_18 = arith.constant 2 : index
      %c0_19 = arith.constant 0 : index
      %51 = vector.load %arg9[%c2_18, %c0_19] : memref<4x128xf32, #tpu.memory_space<vmem>>, vector<1x128xf32>
      tpu.vector_store %arg9[%c2_18, %c0_19], %50 {strides = array<i32>} : memref<4x128xf32, #tpu.memory_space<vmem>>, vector<1x128xf32>,
      %52 = arith.mulf %39, %50 : vector<1x128xf32>
      %53 = arith.subf %25, %52 : vector<1x128xf32>
      %c3_20 = arith.constant 3 : index
      %c0_21 = arith.constant 0 : index
      %54 = vector.load %arg9[%c3_20, %c0_21] : memref<4x128xf32, #tpu.memory_space<vmem>>, vector<1x128xf32>
      tpu.vector_store %arg9[%c3_20, %c0_21], %53 {strides = array<i32>} : memref<4x128xf32, #tpu.memory_space<vmem>>, vector<1x128xf32>,
    } else {
    }
    %c2_i32_10 = arith.constant 2 : i32
    %21 = arith.cmpi eq, %arg0, %c2_i32_10 : i32
    %22 = arith.extui %21 : i1 to i32
    %c0_i32_11 = arith.constant 0 : i32
    %23 = arith.cmpi ne, %22, %c0_i32_11 : i32
    scf.if %23 {
      %24 = arith.index_cast %arg1 : i32 to index
      %c0 = arith.constant 0 : index
      %c0_12 = arith.constant 0 : index
      %25 = vector.load %arg7[%24, %c0, %c0_12] : memref<1x16x128xf32, #tpu.memory_space<vmem>>, vector<1x16x128xf32>
      %26 = vector.shape_cast %25 : vector<1x16x128xf32> to vector<16x128xf32>
      %c2 = arith.constant 2 : index
      %c0_13 = arith.constant 0 : index
      %27 = vector.load %arg9[%c2, %c0_13] : memref<4x128xf32, #tpu.memory_space<vmem>>, vector<1x128xf32>
      %28 = vector.broadcast %27 : vector<1x128xf32> to vector<16x128xf32>
      %29 = arith.mulf %26, %28 : vector<16x128xf32>
      %c3 = arith.constant 3 : index
      %c0_14 = arith.constant 0 : index
      %30 = vector.load %arg9[%c3, %c0_14] : memref<4x128xf32, #tpu.memory_space<vmem>>, vector<1x128xf32>
      %31 = vector.broadcast %30 : vector<1x128xf32> to vector<16x128xf32>
      %32 = arith.addf %29, %31 : vector<16x128xf32>
      %cst = arith.constant 0.000000e+00 : f32
      %33 = vector.broadcast %cst : f32 to vector<16x128xf32>
      %34 = arith.maximumf %32, %33 : vector<16x128xf32>
      %35 = arith.truncf %34 : vector<16x128xf32> to vector<16x128xbf16>
      %c1 = arith.constant 1 : index
      %c0_15 = arith.constant 0 : index
      %36 = vector.load %arg10[%c1, %c0_15] : memref<18x128xbf16, #tpu.memory_space<vmem>>, vector<16x128xbf16>
      tpu.vector_store %arg10[%c1, %c0_15], %35 {strides = array<i32>} : memref<18x128xbf16, #tpu.memory_space<vmem>>, vector<16x128xbf16>,
      %c0_16 = arith.constant 0 : index
      %c0_17 = arith.constant 0 : index
      %37 = vector.load %arg10[%c0_16, %c0_17] : memref<18x128xbf16, #tpu.memory_space<vmem>>, vector<16x128xbf16>
      %c1_18 = arith.constant 1 : index
      %c0_19 = arith.constant 0 : index
      %38 = vector.load %arg10[%c1_18, %c0_19] : memref<18x128xbf16, #tpu.memory_space<vmem>>, vector<16x128xbf16>
      %c2_20 = arith.constant 2 : index
      %c0_21 = arith.constant 0 : index
      %39 = vector.load %arg10[%c2_20, %c0_21] : memref<18x128xbf16, #tpu.memory_space<vmem>>, vector<16x128xbf16>
      %40 = tpu.concatenate %37, %38, %39 in 1 : vector<16x128xbf16>, vector<16x128xbf16>, vector<16x128xbf16> -> vector<16x384xbf16>
      %c0_22 = arith.constant 0 : index
      %c0_23 = arith.constant 0 : index
      %41 = vector.load %arg5[%c0_22, %c0_23] : memref<384x128xbf16, #tpu.memory_space<vmem>>, vector<384x128xbf16>
      %cst_24 = arith.constant dense<0.000000e+00> : vector<16x128xf32>
      %42 = tpu.matmul %40, %41, %cst_24 {dimension_numbers = #tpu.dot_dimension_numbers<[1], [0], [0], [1], [0, 0, 1, 1], [], []>} : vector<16x384xbf16>, vector<384x128xbf16>, vector<16x128xf32> -> vector<16x128xf32>
      %c4 = arith.constant 4 : index
      %c0_25 = arith.constant 0 : index
      %43 = vector.load %arg3[%c4, %c0_25] : memref<5x128xf32, #tpu.memory_space<vmem>>, vector<1x128xf32>
      %44 = vector.broadcast %43 : vector<1x128xf32> to vector<16x128xf32>
      %45 = arith.addf %42, %44 : vector<16x128xf32>
      %c0_26 = arith.constant 0 : index
      %c0_27 = arith.constant 0 : index
      %c0_28 = arith.constant 0 : index
      %46 = vector.load %arg2[%c0_26, %c0_27, %c0_28] : memref<1x16x128xf32, #tpu.memory_space<vmem>>, vector<1x16x128xf32>
      %47 = vector.shape_cast %46 : vector<1x16x128xf32> to vector<16x128xf32>
      %48 = arith.addf %45, %47 : vector<16x128xf32>
      %c0_29 = arith.constant 0 : index
      %c0_30 = arith.constant 0 : index
      %c0_31 = arith.constant 0 : index
      %49 = vector.load %arg6[%c0_29, %c0_30, %c0_31] : memref<1x16x128xf32, #tpu.memory_space<vmem>>, vector<1x16x128xf32>
      %50 = vector.shape_cast %49 : vector<1x16x128xf32> to vector<16x128xf32>
      %51 = vector.shape_cast %48 : vector<16x128xf32> to vector<1x16x128xf32>
      tpu.vector_store %arg6[%c0_29, %c0_30, %c0_31], %51 {strides = array<i32>} : memref<1x16x128xf32, #tpu.memory_space<vmem>>, vector<1x16x128xf32>,
    } else {
    }
    return
  }
  func.func @transform_0(%arg0: i32, %arg1: i32) -> (i32, i32, i32) {
    %c0_i32 = arith.constant 0 : i32
    %c0_i32_0 = arith.constant 0 : i32
    %c0_i32_1 = arith.constant 0 : i32
    return %arg1, %c0_i32, %c0_i32_0 : i32, i32, i32
  }
  func.func @transform_1(%arg0: i32, %arg1: i32) -> (i32, i32) {
    %c0_i32 = arith.constant 0 : i32
    %c0_i32_0 = arith.constant 0 : i32
    %c0_i32_1 = arith.constant 0 : i32
    return %c0_i32, %c0_i32_0 : i32, i32
  }
  func.func @transform_2(%arg0: i32, %arg1: i32) -> (i32, i32) {
    %c0_i32 = arith.constant 0 : i32
    %c0_i32_0 = arith.constant 0 : i32
    %c0_i32_1 = arith.constant 0 : i32
    return %c0_i32, %c0_i32_0 : i32, i32
  }
  func.func @transform_3(%arg0: i32, %arg1: i32) -> (i32, i32) {
    %c0_i32 = arith.constant 0 : i32
    %c0_i32_0 = arith.constant 0 : i32
    %c0_i32_1 = arith.constant 0 : i32
    return %c0_i32, %c0_i32_0 : i32, i32
  }
  func.func @transform_4(%arg0: i32, %arg1: i32) -> (i32, i32, i32) {
    %c0_i32 = arith.constant 0 : i32
    %c0_i32_0 = arith.constant 0 : i32
    %c0_i32_1 = arith.constant 0 : i32
    return %arg1, %c0_i32, %c0_i32_0 : i32, i32, i32
  }
}

</mosaic_0001>

<bundles_post_ra>
// kernel: tile.28
= control target key start
LH: loop header
LB: loop body
LE: loop exit
PB: predicated region body
PF: predicated region fallthrough
CT: control target
= control target key end

     0   :  { %s40_s0 = inlined_call_operand.vmem [shape: f32[4], index: 0, kind: input, shape index: {}]   ;;  %s41_s1 = inlined_call_operand.vmem [shape: f32[32,4], index: 1, kind: output, shape index: {}]  }
   0x1   :  { %v4_v0 = vld [vmem:[%s40_s0] ss:$0 sm:$0xff] }
   0x2   :  { %5 = vst [vmem:[%s41_s1] sm:$0xff] %v4_v0  ;;  %12 = vst [vmem:[%s41_s1 + $0x8] sm:$0xff] %v4_v0 }
   0x3   :  { %13 = vst [vmem:[%s41_s1 + $0x10] sm:$0xff] %v4_v0  ;;  %14 = vst [vmem:[%s41_s1 + $0x18] sm:$0xff] %v4_v0 }

// kernel: tile.45
= control target key start
LH: loop header
LB: loop body
LE: loop exit
PB: predicated region body
PF: predicated region fallthrough
CT: control target
= control target key end

     0   :  { %s259_s10 = smov 124   ;;  %s260_s11 = smov 116   ;;  %vm3_vm0 = vcmask 31744   ;;  %vm9_vm1 = vcmask 1048544   ;;  %vm15_vm2 = vcmask 1015744   ;;  %vm21_vm3 = vcmask 982944   ;;  %s399_s0 = inlined_call_operand.vmem [shape: f32[32,4], index: 0, kind: input, shape index: {}]   ;;  %s400_s1 = inlined_call_operand.vmem [shape: f32[1,128], index: 1, kind: output, shape index: {}]  }
   0x1   :  { %v197_v0 = vld [vmem:[%s399_s0 + $0x1f] sm:$0x1]   ;;  %v199_v1 = vld [vmem:[%s399_s0 + $0x1d] sm:$0x1]   ;;  %v198_v2 = vld [vmem:[%s399_s0 + $0x1e] sm:$0x1]  }
   0x2   :  { %7 = vrot.lane.b32.xlu0 %v197_v0, %s259_s10  ;;  %19 = vrot.lane.b32.xlu1 %v199_v1, %s260_s11  ;;  %v200_v3 = vld [vmem:[%s399_s0 + $0x1c] sm:$0x1]   ;;  %s261_s16 = smov 120   ;;  %s262_s17 = smov 112   ;;  %v201_v4 = vld [vmem:[%s399_s0 + $0x1b] sm:$0x1]  }
   0x3   :  { %v202_v5 = vld [vmem:[%s399_s0 + $0x1a] sm:$0x1]   ;;  %s263_s22 = smov 108   ;;  %s264_s23 = smov 104   ;;  %v203_v6 = vld [vmem:[%s399_s0 + $0x19] sm:$0x1]  }
   0x4   :  { %v204_v7 = vld [vmem:[%s399_s0 + $0x18] sm:$0x1]   ;;  %s265_s28 = smov 100   ;;  %s266_s29 = smov 96   ;;  %v205_v8 = vld [vmem:[%s399_s0 + $0x17] sm:$0x1]  }
   0x5   :  { %v206_v9 = vld [vmem:[%s399_s0 + $0x16] sm:$0x1]   ;;  %v2_v10 = vld [vmem:[%s399_s0] sm:$0x1]   ;;  %s267_s7 = smov 92   ;;  %s268_s8 = smov 88  }
   0x6   :  { %13 = vrot.lane.b32.xlu0 %v198_v2, %s261_s16  ;;  %25 = vrot.lane.b32.xlu1 %v200_v3, %s262_s17  ;;  %4 = vst.msk [vmem:[#allocation0] sm:$0x1] %vm3_vm0, %v2_v10   ;;  %v207_v11 = vld [vmem:[%s399_s0 + $0x15] sm:$0x1]   ;;  %v208_v12 = vld [vmem:[%s399_s0 + $0x14] sm:$0x1]  }
   0x7   :  { %s269_s13 = smov 84   ;;  %s270_s14 = smov 80   ;;  %v209_v13 = vld [vmem:[%s399_s0 + $0x13] sm:$0x1]   ;;  %v210_v14 = vld [vmem:[%s399_s0 + $0x12] sm:$0x1]  }
   0x8   :  { %s271_s19 = smov 76   ;;  %s272_s20 = smov 72   ;;  %v211_v15 = vld [vmem:[%s399_s0 + $0x11] sm:$0x1]   ;;  %v212_v16 = vld [vmem:[%s399_s0 + $0x10] sm:$0x1]  }
   0x9   :  { %s273_s25 = smov 68   ;;  %s274_s26 = smov 64   ;;  %v213_v17 = vld [vmem:[%s399_s0 + $0xf] sm:$0x1]   ;;  %v214_v18 = vld [vmem:[%s399_s0 + $0xe] sm:$0x1]  }
   0xa   :  { %31 = vrot.lane.b32.xlu0 %v201_v4, %s263_s22  ;;  %37 = vrot.lane.b32.xlu1 %v202_v5, %s264_s23  ;;  %s275_s2 = smov 60   ;;  %s276_s3 = smov 56   ;;  %v215_v19 = vld [vmem:[%s399_s0 + $0xd] sm:$0x1]   ;;  %v216_v20 = vld [vmem:[%s399_s0 + $0xc] sm:$0x1]  }
   0xb   :  { %s278_s9 = smov 48   ;;  %v217_v21 = vld [vmem:[%s399_s0 + $0xb] sm:$0x1]   ;;  %v218_v22 = vld [vmem:[%s399_s0 + $0xa] sm:$0x1]   ;;  %s280_s15 = smov 40  }
   0xc   :  { %v219_v23 = vld [vmem:[%s399_s0 + $0x9] sm:$0x1]   ;;  %v220_v24 = vld [vmem:[%s399_s0 + $0x8] sm:$0x1]   ;;  %s282_s21 = smov 32   ;;  %s284_s27 = smov 24  }
   0xd   :  { %v221_v25 = vld [vmem:[%s399_s0 + $0x7] sm:$0x1]   ;;  %v222_v26 = vld [vmem:[%s399_s0 + $0x6] sm:$0x1]   ;;  %v223_v27 = vld [vmem:[%s399_s0 + $0x5] sm:$0x1]  }
   0xe   :  { %43 = vrot.lane.b32.xlu0 %v203_v6, %s265_s28  ;;  %49 = vrot.lane.b32.xlu1 %v204_v7, %s266_s29  ;;  %v224_v28 = vld [vmem:[%s399_s0 + $0x4] sm:$0x1]   ;;  %s286_s4 = smov 16   ;;  %v225_v29 = vld [vmem:[%s399_s0 + $0x3] sm:$0x1]   ;;  %s288_s10 = smov 8  }
   0xf   :  { %v226_v30 = vld [vmem:[%s399_s0 + $0x2] sm:$0x1]   ;;  %v227_v31 = vld [vmem:[%s399_s0 + $0x1] sm:$0x1]   ;;  %s289_s0 = smov 4   ;;  %vm27_vm4 = vcmask 950144  }
  0x10   :  { %vm33_vm5 = vcmask 917344   ;;  %vm39_vm6 = vcmask 884544   ;;  %vm45_vm7 = vcmask 851744   ;;  %vm51_vm8 = vcmask 818944  }
  0x11   :  { %vm57_vm9 = vcmask 786144   ;;  %vm63_vm10 = vcmask 753344   ;;  %vm69_vm11 = vcmask 720544   ;;  %vm75_vm12 = vcmask 687744  }
  0x12   :  { %55 = vrot.lane.b32.xlu0 %v205_v8, %s267_s7  ;;  %61 = vrot.lane.b32.xlu1 %v206_v9, %s268_s8  ;;  %s277_s8 = smov 52   ;;  %vm81_vm13 = vcmask 654944   ;;  %vm87_vm14 = vcmask 622144   ;;  %vm93_vm15 = vcmask 589344   ;;  %vm99_vm0 = vcmask 556544  }
  0x16   :  { %67 = vrot.lane.b32.xlu0 %v207_v11, %s269_s13  ;;  %73 = vrot.lane.b32.xlu1 %v208_v12, %s270_s14  ;;  %s279_s14 = smov 44  }
  0x1a   :  { %79 = vrot.lane.b32.xlu0 %v209_v13, %s271_s19  ;;  %85 = vrot.lane.b32.xlu1 %v210_v14, %s272_s20  ;;  %s281_s20 = smov 36  }
  0x1e   :  { %91 = vrot.lane.b32.xlu0 %v211_v15, %s273_s25  ;;  %97 = vrot.lane.b32.xlu1 %v212_v16, %s274_s26  ;;  %s283_s26 = smov 28  }
  0x22   :  { %103 = vrot.lane.b32.xlu0 %v213_v17, %s275_s2  ;;  %109 = vrot.lane.b32.xlu1 %v214_v18, %s276_s3  ;;  %s285_s3 = smov 20  }
  0x26   :  { %115 = vrot.lane.b32.xlu0 %v215_v19, %s277_s8  ;;  %121 = vrot.lane.b32.xlu1 %v216_v20, %s278_s9  ;;  %s287_s9 = smov 12  }
  0x2a   :  { %127 = vrot.lane.b32.xlu0 %v217_v21, %s279_s14  ;;  %133 = vrot.lane.b32.xlu1 %v218_v22, %s280_s15 }
  0x2e   :  { %139 = vrot.lane.b32.xlu0 %v219_v23, %s281_s20  ;;  %145 = vrot.lane.b32.xlu1 %v220_v24, %s282_s21 }
  0x32   :  { %151 = vrot.lane.b32.xlu0 %v221_v25, %s283_s26  ;;  %157 = vrot.lane.b32.xlu1 %v222_v26, %s284_s27 }
  0x36   :  { %163 = vrot.lane.b32.xlu0 %v223_v27, %s285_s3  ;;  %169 = vrot.lane.b32.xlu1 %v224_v28, %s286_s4 }
  0x3a   :  { %175 = vrot.lane.b32.xlu0 %v225_v29, %s287_s9  ;;  %181 = vrot.lane.b32.xlu1 %v226_v30, %s288_s10 }
  0x3e   :  { %187 = vrot.lane.b32.xlu0 %v227_v31, %s289_s0 }
  0x74   :  { %v8_v32 = vpop.permute.xlu0 %7   ;;  %v20_v33 = vpop.permute.xlu1 %19  }
  0x75   :  { %10 = vst.msk [vmem:[#allocation0] sm:$0x1] %vm9_vm1, %v8_v32   ;;  %vm105_vm1 = vcmask 523744  }
  0x78   :  { %v14_v34 = vpop.permute.xlu0 %13   ;;  %v26_v35 = vpop.permute.xlu1 %25  }
  0x79   :  { %16 = vst.msk [vmem:[#allocation0] sm:$0x1] %vm15_vm2, %v14_v34   ;;  %vm111_vm2 = vcmask 490944  }
  0x7a   :  { %22 = vst.msk [vmem:[#allocation0] sm:$0x1] %vm21_vm3, %v20_v33   ;;  %vm117_vm3 = vcmask 458144  }
  0x7b   :  { %28 = vst.msk [vmem:[#allocation0] sm:$0x1] %vm27_vm4, %v26_v35   ;;  %vm123_vm4 = vcmask 425344  }
  0x7c   :  { %v32_v36 = vpop.permute.xlu0 %31   ;;  %v38_v37 = vpop.permute.xlu1 %37  }
  0x7d   :  { %34 = vst.msk [vmem:[#allocation0] sm:$0x1] %vm33_vm5, %v32_v36   ;;  %vm129_vm5 = vcmask 392544  }
  0x7e   :  { %40 = vst.msk [vmem:[#allocation0] sm:$0x1] %vm39_vm6, %v38_v37   ;;  %vm135_vm6 = vcmask 359744  }
  0x80   :  { %v44_v38 = vpop.permute.xlu0 %43   ;;  %v50_v39 = vpop.permute.xlu1 %49  }
  0x81   :  { %46 = vst.msk [vmem:[#allocation0] sm:$0x1] %vm45_vm7, %v44_v38   ;;  %vm141_vm7 = vcmask 326944  }
  0x82   :  { %52 = vst.msk [vmem:[#allocation0] sm:$0x1] %vm51_vm8, %v50_v39   ;;  %vm147_vm8 = vcmask 294144  }
  0x84   :  { %v56_v40 = vpop.permute.xlu0 %55   ;;  %v62_v41 = vpop.permute.xlu1 %61  }
  0x85   :  { %58 = vst.msk [vmem:[#allocation0] sm:$0x1] %vm57_vm9, %v56_v40   ;;  %vm153_vm9 = vcmask 261344  }
  0x86   :  { %64 = vst.msk [vmem:[#allocation0] sm:$0x1] %vm63_vm10, %v62_v41   ;;  %vm159_vm10 = vcmask 228544  }
  0x88   :  { %v68_v42 = vpop.permute.xlu0 %67   ;;  %v74_v43 = vpop.permute.xlu1 %73  }
  0x89   :  { %70 = vst.msk [vmem:[#allocation0] sm:$0x1] %vm69_vm11, %v68_v42   ;;  %vm165_vm11 = vcmask 195744  }
  0x8a   :  { %76 = vst.msk [vmem:[#allocation0] sm:$0x1] %vm75_vm12, %v74_v43   ;;  %vm171_vm12 = vcmask 162944  }
  0x8c   :  { %v80_v44 = vpop.permute.xlu0 %79   ;;  %v86_v45 = vpop.permute.xlu1 %85  }
  0x8d   :  { %82 = vst.msk [vmem:[#allocation0] sm:$0x1] %vm81_vm13, %v80_v44   ;;  %vm177_vm13 = vcmask 130144  }
  0x8e   :  { %88 = vst.msk [vmem:[#allocation0] sm:$0x1] %vm87_vm14, %v86_v45   ;;  %vm183_vm14 = vcmask 97344  }
  0x90   :  { %v92_v46 = vpop.permute.xlu0 %91   ;;  %v98_v47 = vpop.permute.xlu1 %97  }
  0x91   :  { %94 = vst.msk [vmem:[#allocation0] sm:$0x1] %vm93_vm15, %v92_v46   ;;  %vm189_vm15 = vcmask 64544  }
  0x92   :  { %100 = vst.msk [vmem:[#allocation0] sm:$0x1] %vm99_vm0, %v98_v47  }
  0x94   :  { %v104_v48 = vpop.permute.xlu0 %103   ;;  %v110_v49 = vpop.permute.xlu1 %109  }
  0x95   :  { %106 = vst.msk [vmem:[#allocation0] sm:$0x1] %vm105_vm1, %v104_v48  }
  0x96   :  { %112 = vst.msk [vmem:[#allocation0] sm:$0x1] %vm111_vm2, %v110_v49  }
  0x98   :  { %v116_v50 = vpop.permute.xlu0 %115   ;;  %v122_v51 = vpop.permute.xlu1 %121  }
  0x99   :  { %118 = vst.msk [vmem:[#allocation0] sm:$0x1] %vm117_vm3, %v116_v50  }
  0x9a   :  { %124 = vst.msk [vmem:[#allocation0] sm:$0x1] %vm123_vm4, %v122_v51  }
  0x9c   :  { %v128_v52 = vpop.permute.xlu0 %127   ;;  %v134_v53 = vpop.permute.xlu1 %133  }
  0x9d   :  { %130 = vst.msk [vmem:[#allocation0] sm:$0x1] %vm129_vm5, %v128_v52  }
  0x9e   :  { %136 = vst.msk [vmem:[#allocation0] sm:$0x1] %vm135_vm6, %v134_v53  }
  0xa0   :  { %v140_v54 = vpop.permute.xlu0 %139   ;;  %v146_v55 = vpop.permute.xlu1 %145  }
  0xa1   :  { %142 = vst.msk [vmem:[#allocation0] sm:$0x1] %vm141_vm7, %v140_v54  }
  0xa2   :  { %148 = vst.msk [vmem:[#allocation0] sm:$0x1] %vm147_vm8, %v146_v55  }
  0xa4   :  { %v152_v56 = vpop.permute.xlu0 %151   ;;  %v158_v57 = vpop.permute.xlu1 %157  }
  0xa5   :  { %154 = vst.msk [vmem:[#allocation0] sm:$0x1] %vm153_vm9, %v152_v56  }
  0xa6   :  { %160 = vst.msk [vmem:[#allocation0] sm:$0x1] %vm159_vm10, %v158_v57  }
  0xa8   :  { %v164_v58 = vpop.permute.xlu0 %163   ;;  %v170_v59 = vpop.permute.xlu1 %169  }
  0xa9   :  { %166 = vst.msk [vmem:[#allocation0] sm:$0x1] %vm165_vm11, %v164_v58  }
  0xaa   :  { %172 = vst.msk [vmem:[#allocation0] sm:$0x1] %vm171_vm12, %v170_v59  }
  0xac   :  { %v176_v60 = vpop.permute.xlu0 %175   ;;  %v182_v61 = vpop.permute.xlu1 %181  }
  0xad   :  { %178 = vst.msk [vmem:[#allocation0] sm:$0x1] %vm177_vm13, %v176_v60  }
  0xae   :  { %184 = vst.msk [vmem:[#allocation0] sm:$0x1] %vm183_vm14, %v182_v61  }
  0xb0   :  { %v188_v62 = vpop.permute.xlu0 %187  }
  0xb1   :  { %190 = vst.msk [vmem:[#allocation0] sm:$0x1] %vm189_vm15, %v188_v62  }
  0xb8   :  { %v194_v63 = vld [vmem:[#allocation0] sm:$0x1] }
  0xb9   :  { %196 = vst [vmem:[%s400_s1] sm:$0x1] %v194_v63 }

// kernel: _residual_block_impl.1
= control target key start
LH: loop header
LB: loop body
LE: loop exit
PB: predicated region body
PF: predicated region fallthrough
CT: control target
= control target key end

     0   :  { %s1532_s15 = smov 0   ;;  %s1534_s16 = smov 0   ;;  %s1760_s0 = inlined_call_operand.vmem [shape: f32[1,16,128], index: 0, kind: input, shape index: {}]   ;;  %s1761_s1 = inlined_call_operand.vmem [shape: f32[5,128], index: 1, kind: input, shape index: {}]   ;;  %s1762_s2 = inlined_call_operand.vmem [shape: bf16[384,128], index: 2, kind: input, shape index: {}]   ;;  %s1763_s3 = inlined_call_operand.vmem [shape: bf16[384,128], index: 3, kind: input, shape index: {}]   ;;  %s1764_s4 = inlined_call_operand.vmem [shape: f32[1,16,128], index: 4, kind: output, shape index: {}]  }
   0x1   :  { %s1536_s17 = smov 0  }
   0x2 LB: > { %s26_s18 = sadd.s32 1, %s1486_s16  ;;  %p1189_p0 = scmp.ge.s32.totalorder %s1490_s17, 1  ;;  %s1490_s17 = sphi %s1536_s17, %s14_s17   ;;  %s1486_s16 = sphi %s1534_s16, %s1766_s16   ;;  %s1482_s15 = sphi %s1532_s15, %s1765_s15  }
   0x3   : > { %p28_p1 = scmp.ge.s32.totalorder %s26_s18, 3  ;;  %p174_p2 = scmp.lt.s32.totalorder %s1490_s17, 4 }
   0x5   : > { %s1768_s18 = smov (%p28_p1, %s26_s18), 0  ;;  %p175_p3 = pnand %p1189_p0, %p174_p2 }
   0x6   : > { %p211_p4 = scmp.eq.s32.totalorder (!%p175_p3), %s1482_s15, 0 }
   0x7   : > { %178 = sbr.rel (%p175_p3) target bundleno = 1839 (0x72f), region = 36 }
   0xe   : > { %216 = sbr.rel (!%p211_p4) target bundleno = 21 (0x15), region = 40  ;;  %vm219_vm0 = vcmask (%p211_p4), 1040384   ;;  %vm220_vm1 = vsmask.f32 (%p211_p4), 256  ;;  %v222_v0 = vld [vmem:[#allocation5] sm:$0x1] (%p211_p4) }
   0xf   : > { %v1492_v1 = vmov (%p211_p4), 0.0   ;;  %vm221_vm2 = vmand (%p211_p4), %vm219_vm0, %vm220_vm1  ;;  %vm225_vm3 = vsmask.f32 (%p211_p4), 7938  ;;  %v227_v2 = vld [vmem:[#allocation5 + $0x8] sm:$0x1] (%p211_p4) }
  0x10   : > { %217 = vst [vmem:[#allocation3] sm:$0xf] (%p211_p4), %v1492_v1  ;;  %218 = vst [vmem:[#allocation4] sm:$0xf] (%p211_p4), %v1492_v1  ;;  %v223_v3 = vsel (%p211_p4), %vm221_vm2, 0, %v222_v0 }
  0x11   : > { %vm226_vm4 = vmand (%p211_p4), %vm219_vm0, %vm225_vm3  ;;  %224 = vst [vmem:[#allocation5] sm:$0x1] (%p211_p4), %v223_v3 }
  0x12   : > { %v228_v4 = vsel (%p211_p4), %vm226_vm4, 0, %v227_v2 }
  0x13   : > { %229 = vst [vmem:[#allocation5 + $0x8] sm:$0x1] (%p211_p4), %v228_v4 }
  0x15 PF: > { %p1191_p5 = scmp.ne.s32.totalorder %s1482_s15, 0 }
  0x16   : > { %v233_v5 = vld [vmem:[%s1760_s0] sm:$0xff] (!%p1191_p5)  ;;  %v234_v6 = vld [vmem:[%s1760_s0 + $0x8] sm:$0xff] (!%p1191_p5) }
  0x17   : > { %232 = sbr.rel (%p1191_p5) target bundleno = 42 (0x2a), region = 44  ;;  %v236_v7 = vadd.f32 (!%p1191_p5), %v234_v6, %v233_v5  ;;  %v246_v8 = vmul.f32 (!%p1191_p5), %v233_v5, %v233_v5  ;;  %v247_v9 = vmul.f32 (!%p1191_p5), %v234_v6, %v234_v6  ;;  %v235_v20 = vld [vmem:[#allocation3] sm:$0x1] (!%p1191_p5)  ;;  %v245_v23 = vld [vmem:[#allocation3 + $0x1] sm:$0x1] (!%p1191_p5) }
  0x19   : > { %v237_v10 = vrot.slane (!%p1191_p5), %v236_v7, 4  ;;  %v248_v11 = vadd.f32 (!%p1191_p5), %v247_v9, %v246_v8 }
  0x1b   : > { %v238_v12 = vadd.f32 (!%p1191_p5), %v237_v10, %v236_v7  ;;  %v249_v13 = vrot.slane (!%p1191_p5), %v248_v11, 4 }
  0x1d   : > { %v239_v14 = vrot.slane (!%p1191_p5), %v238_v12, 2  ;;  %v250_v15 = vadd.f32 (!%p1191_p5), %v249_v13, %v248_v11 }
  0x1f   : > { %v240_v16 = vadd.f32 %v239_v14, %v238_v12  ;;  %v251_v17 = vrot.slane %v250_v15, 2 }
  0x21   : > { %v241_v18 = vrot.slane %v240_v16, 1  ;;  %v252_v19 = vadd.f32 %v251_v17, %v250_v15 }
  0x23   : > { %v242_v21 = vadd.f32 %v241_v18, %v240_v16  ;;  %v253_v22 = vrot.slane %v252_v19, 1 }
  0x25   : > { %v243_v24 = vadd.f32 %v242_v21, %v235_v20  ;;  %v254_v25 = vadd.f32 %v253_v22, %v252_v19 }
  0x27   : > { %244 = vst [vmem:[#allocation3] sm:$0x1] %v243_v24  ;;  %v255_v26 = vadd.f32 %v254_v25, %v245_v23 }
  0x29   : > { %256 = vst [vmem:[#allocation3 + $0x1] sm:$0x1] %v255_v26 }
  0x2a PF: > { %p257_p6 = scmp.eq.s32.totalorder %s1482_s15, 1 }
  0x2b   : > { %s1493_s23 = smov (%p257_p6), 4   ;;  %s1494_s24 = smov (%p257_p6), 8   ;;  %v262_v45 = vld [vmem:[%s1761_s1] sm:$0x1] (%p257_p6)  ;;  %v263_v48 = vld [vmem:[%s1761_s1 + $0x1] sm:$0x1] (%p257_p6) }
  0x2c   : > { %261 = sbr.rel (!%p257_p6) target bundleno = 666 (0x29a), region = 48  ;;  %s1495_s25 = smov (%p257_p6), 16  }
  0x2d   : > { %s1496_s26 = smov (%p257_p6), 32   ;;  %s1497_s27 = smov (%p257_p6), 64  }
  0x30   : > { %v264_v27 = vld [vmem:[#allocation3] sm:$0x3] (%p257_p6) }
  0x31   : > { %265 = vrot.lane.b32.xlu0 (%p257_p6), %v264_v27, %s1493_s23 }
  0xa3   : > { %v266_v28 = vpop.permute.xlu0 %265 }
  0xa4   : > { %v267_v29 = vadd.f32 %v266_v28, %v264_v27 }
  0xa6   : > { %268 = vrot.lane.b32.xlu0 %v267_v29, %s1494_s24 }
 0x118   : > { %v269_v30 = vpop.permute.xlu0 %268 }
 0x119   : > { %v270_v31 = vadd.f32 %v269_v30, %v267_v29 }
 0x11b   : > { %271 = vrot.lane.b32.xlu1 %v270_v31, %s1495_s25 }
 0x18d   : > { %v272_v32 = vpop.permute.xlu1 %271 }
 0x18e   : > { %v273_v33 = vadd.f32 %v272_v32, %v270_v31 }
 0x190   : > { %274 = vrot.lane.b32.xlu1 %v273_v33, %s1496_s26 }
 0x202   : > { %v275_v34 = vpop.permute.xlu1 %274 }
 0x203   : > { %v276_v35 = vadd.f32 %v275_v34, %v273_v33 }
 0x205   : > { %277 = vrot.lane.b32.xlu0 %v276_v35, %s1497_s27 }
 0x277   : > { %v278_v36 = vpop.permute.xlu0 %277 }
 0x278   : > { %v279_v37 = vadd.f32 %v278_v36, %v276_v35 }
 0x27a   : > { %v280_v38 = vmul.f32 0.001953125, %v279_v37 }
 0x27c   : > { %v281_v39 = vmul.f32 %v280_v38, %v280_v38 }
 0x27e   : > { %v283_v40 = vrot.slane %v281_v39, 7 }
 0x280   : > { %v285_v41 = vsub.f32 %v280_v38, %v283_v40 }
 0x282   : > { %v286_v42 = vmax.f32 %v285_v41, 0.0 }
 0x284   : > { %v287_v43 = vadd.f32 1e-05, %v286_v42 }
 0x286   : > { %1410 = vrsqrt.f32 %v287_v43 }
 0x290   : > { %v1411_v44 = vpop.eup %1410 }
 0x291   : > { %v290_v46 = vrot.slane %v1411_v44, 1 }
 0x293   : > { %v292_v47 = vmul.f32 %v290_v46, %v262_v45 }
 0x295   : > { %293 = vst [vmem:[#allocation3 + $0x2] sm:$0x1] %v292_v47  ;;  %v294_v49 = vmul.f32 %v292_v47, %v280_v38 }
 0x297   : > { %v295_v50 = vsub.f32 %v263_v48, %v294_v49 }
 0x299   : > { %296 = vst [vmem:[#allocation3 + $0x3] sm:$0x1] %v295_v50 }
 0x29a PF: > { %p1193_p7 = scmp.ne.s32.totalorder %s1482_s15, 1 }
 0x29b   : > { %v1412_v51 = vld [vmem:[%s1762_s2 + $0x40] sm:$0xff] (!%p1193_p7)   ;;  %v1498_v52 = vmov (!%p1193_p7), 0.0   ;;  %v1415_v55 = vld [vmem:[%s1762_s2 + $0x48] sm:$0xff] (!%p1193_p7)   ;;  %vm1499_vm5 = vmmov (!%p1193_p7), 0   ;;  %v1418_v58 = vld [vmem:[%s1762_s2 + $0x50] sm:$0xff] (!%p1193_p7)   ;;  %vm347_vm6 = vcmask (!%p1193_p7), 1043456  }
 0x29c   : > { %299 = sbr.rel (%p1193_p7) target bundleno = 948 (0x3b4), region = 52  ;;  %1331 = vmatprep.subr.bf16.mxu1 (!%p1193_p7), %v1498_v52  ;;  %v1413_v53 = vld [vmem:[%s1762_s2] sm:$0xff] (!%p1193_p7)   ;;  %1269 = vmatprep.subr.bf16.mxu0 (!%p1193_p7), %v1412_v51  ;;  %v1416_v56 = vld [vmem:[%s1762_s2 + $0x8] sm:$0xff] (!%p1193_p7)   ;;  %v1419_v59 = vld [vmem:[%s1762_s2 + $0x10] sm:$0xff] (!%p1193_p7)   ;;  %vm354_vm7 = vcmask (!%p1193_p7), 1040384   ;;  %vm389_vm14 = vcmask (!%p1193_p7), 1046528  }
 0x29d   : > { %v1414_v54 = vld [vmem:[%s1762_s2 + $0x80] sm:$0xff] (!%p1193_p7)   ;;  %1270 = vmatpush3.bf16.msra.mxu0 (!%p1193_p7), %v1413_v53  ;;  %1347 = vmatprep.mubr.msk.bf16.mxu1 (!%p1193_p7), %vm1499_vm5, %v1498_v52  ;;  %v1417_v57 = vld [vmem:[%s1762_s2 + $0x88] sm:$0xff] (!%p1193_p7)   ;;  %v1420_v60 = vld [vmem:[%s1762_s2 + $0x90] sm:$0xff] (!%p1193_p7)   ;;  %vm324_vm8 = vsmask.f32 (!%p1193_p7), 256 }
 0x29e   : > { %1332 = vmatpush3.bf16.msra.mxu1 (!%p1193_p7), %v1414_v54  ;;  %1271 = vmatprep.subr.bf16.mxu0 (!%p1193_p7), %v1415_v55  ;;  %v1421_v61 = vld [vmem:[%s1762_s2 + $0x58] sm:$0xff] (!%p1193_p7)   ;;  %v1424_v0 = vld [vmem:[%s1762_s2 + $0x60] sm:$0xff] (!%p1193_p7)   ;;  %v1427_v3 = vld [vmem:[%s1762_s2 + $0x68] sm:$0xff] (!%p1193_p7)   ;;  %vm325_vm9 = vsmask.f32 (!%p1193_p7), 4368 }
 0x29f   : > { %1333 = vmatprep.subr.bf16.mxu1 (!%p1193_p7), %v1498_v52  ;;  %v1422_v62 = vld [vmem:[%s1762_s2 + $0x18] sm:$0xff] (!%p1193_p7)   ;;  %v1425_v1 = vld [vmem:[%s1762_s2 + $0x20] sm:$0xff] (!%p1193_p7)   ;;  %v1428_v4 = vld [vmem:[%s1762_s2 + $0x28] sm:$0xff] (!%p1193_p7)   ;;  %vm348_vm10 = vsmask.f32 (!%p1193_p7), 7938 }
 0x2a0   : > { %v1423_v63 = vld [vmem:[%s1762_s2 + $0x98] sm:$0xff] (!%p1193_p7)   ;;  %v1426_v2 = vld [vmem:[%s1762_s2 + $0xa0] sm:$0xff] (!%p1193_p7)   ;;  %v1429_v5 = vld [vmem:[%s1762_s2 + $0xa8] sm:$0xff] (!%p1193_p7)   ;;  %vm372_vm15 = vsmask.f32 (!%p1193_p7), 7424 }
 0x2a1   : > { %1272 = vmatpush3.bf16.msra.mxu0 (!%p1193_p7), %v1416_v56  ;;  %v1430_v6 = vld [vmem:[%s1762_s2 + $0x70] sm:$0xff] (!%p1193_p7)   ;;  %v1433_v9 = vld [vmem:[%s1762_s2 + $0x78] sm:$0xff] (!%p1193_p7)   ;;  %v300_v10 = vld [vmem:[%s1760_s0] sm:$0xff] (!%p1193_p7) }
 0x2a2   : > { %1334 = vmatpush3.bf16.msra.mxu1 (!%p1193_p7), %v1417_v57  ;;  %1273 = vmatprep.subr.bf16.mxu0 (!%p1193_p7), %v1418_v58  ;;  %v1431_v7 = vld [vmem:[%s1762_s2 + $0x30] sm:$0xff] (!%p1193_p7)   ;;  %v301_v11 = vld [vmem:[%s1760_s0 + $0x8] sm:$0xff] (!%p1193_p7)  ;;  %v1434_v16 = vld [vmem:[%s1762_s2 + $0x38] sm:$0xff] (!%p1193_p7)  }
 0x2a3   : > { %1335 = vmatprep.subr.bf16.mxu1 %v1498_v52  ;;  %v1432_v8 = vld [vmem:[%s1762_s2 + $0xb0] sm:$0xff]   ;;  %v1435_v19 = vld [vmem:[%s1762_s2 + $0xb8] sm:$0xff]   ;;  %vm355_vm11 = vmand %vm354_vm7, %vm324_vm8 }
 0x2a4   : > { %v1194_v12 = vld [vmem:[#allocation3 + $0x2] ss:$0 sm:$0xff]  ;;  %v1195_v15 = vld [vmem:[#allocation3 + $0x3] ss:$0 sm:$0xff]  ;;  %vm326_vm12 = vmor %vm324_vm8, %vm325_vm9 }
 0x2a5   : > { %1274 = vmatpush3.bf16.msra.mxu0 %v1419_v59  ;;  %v307_v13 = vmul.f32 %v1194_v12, %v300_v10  ;;  %v308_v14 = vmul.f32 %v1194_v12, %v301_v11  ;;  %vm349_vm13 = vmand %vm347_vm6, %vm348_vm10  ;;  %v350_v30 = vld [vmem:[#allocation5] sm:$0xf]  ;;  %v356_v31 = vld [vmem:[#allocation5 + $0x8] sm:$0x1] }
 0x2a6   : > { %1336 = vmatpush3.bf16.msra.mxu1 %v1420_v60  ;;  %1275 = vmatprep.subr.bf16.mxu0 %v1421_v61 }
 0x2a7   : > { %1337 = vmatprep.subr.bf16.mxu1 %v1498_v52  ;;  %v314_v17 = vadd.f32 %v1195_v15, %v307_v13  ;;  %v315_v18 = vadd.f32 %v1195_v15, %v308_v14 }
 0x2a9   : > { %1276 = vmatpush3.bf16.msra.mxu0 %v1422_v62  ;;  %v316_v20 = vmax.f32 %v314_v17, 0.0  ;;  %v317_v21 = vmax.f32 %v315_v18, 0.0 }
 0x2aa   : > { %1338 = vmatpush3.bf16.msra.mxu1 %v1423_v63  ;;  %1277 = vmatprep.subr.bf16.mxu0 %v1424_v0 }
 0x2ab   : > { %1339 = vmatprep.subr.bf16.mxu1 %v1498_v52  ;;  %v1264_v22 = vpack.c.bf16 %v316_v20, %v316_v20  ;;  %v1265_v23 = vpack.c.bf16 %v317_v21, %v317_v21 }
 0x2ad   : > { %1278 = vmatpush3.bf16.msra.mxu0 %v1425_v1  ;;  %v328_v24 = vshrl.u32 %v1264_v22, 16  ;;  %v331_v25 = vshll.u32 %v1264_v22, 16  ;;  %v336_v26 = vshrl.u32 %v1265_v23, 16  ;;  %v339_v27 = vshll.u32 %v1265_v23, 16 }
 0x2ae   : > { %1340 = vmatpush3.bf16.msra.mxu1 %v1426_v2  ;;  %1279 = vmatprep.subr.bf16.mxu0 %v1427_v3 }
 0x2af   : > { %1341 = vmatprep.subr.bf16.mxu1 %v1498_v52  ;;  %v330_v28 = vrot.slane %v328_v24, 7  ;;  %v338_v29 = vrot.slane %v336_v26, 7 }
 0x2b1   : > { %1280 = vmatpush3.bf16.msra.mxu0 %v1428_v4  ;;  %v333_v32 = vor.u32 %v331_v25, %v330_v28  ;;  %v334_v33 = vrot.slane %v330_v28, 4  ;;  %v341_v34 = vor.u32 %v339_v27, %v338_v29  ;;  %v343_v35 = vrot.slane %v338_v29, 4 }
 0x2b2   : > { %1342 = vmatpush3.bf16.msra.mxu1 %v1429_v5  ;;  %1281 = vmatprep.subr.bf16.mxu0 %v1430_v6 }
 0x2b3   : > { %1343 = vmatprep.subr.bf16.mxu1 %v1498_v52  ;;  %v342_v36 = vsel %vm326_vm12, %v334_v33, %v341_v34  ;;  %v351_v37 = vsel %vm349_vm13, %v333_v32, %v350_v30  ;;  %v357_v38 = vsel %vm355_vm11, %v343_v35, %v356_v31 }
 0x2b4   : > { %352 = vst [vmem:[#allocation5] sm:$0xf] %v351_v37  ;;  %353 = vst [vmem:[#allocation5 + $0x4] sm:$0xf] %v342_v36 }
 0x2b5   : > { %1282 = vmatpush3.bf16.msra.mxu0 %v1431_v7  ;;  %358 = vst [vmem:[#allocation5 + $0x8] sm:$0x1] %v357_v38 }
 0x2b6   : > { %1344 = vmatpush3.bf16.msra.mxu1 %v1432_v8  ;;  %1283 = vmatprep.subr.bf16.mxu0 %v1433_v9 }
 0x2b7   : > { %1345 = vmatprep.subr.bf16.mxu1 %v1498_v52 }
 0x2b9   : > { %1284 = vmatpush3.bf16.msra.mxu0 %v1434_v16  ;;  %v672_v16 = vld [vmem:[#allocation4] sm:$0x1] }
 0x2ba   : > { %1346 = vmatpush3.bf16.msra.mxu1 %v1435_v19  ;;  %v682_v19 = vld [vmem:[#allocation4 + $0x1] sm:$0x1] }
 0x2bb   : > { %v359_v39 = vld [vmem:[#allocation5] sm:$0xf]  ;;  %v360_v40 = vld [vmem:[#allocation5 + $0x4] sm:$0xf] }
 0x2bc   : > { %v1198_v41 = vcombine.low %v359_v39, %v360_v40  ;;  %v1437_v42 = vld [vmem:[#allocation5 + $0x8] ss:$0 sps:$4 sm:$0x11]   ;;  %v362_v43 = vld [vmem:[#allocation5] sm:$0xe] }
 0x2bd   : > { %v1200_v44 = vcombine.low %v362_v43, %v360_v40  ;;  %v381_v47 = vshll.u32 %v1437_v42, 16  ;;  %v391_v48 = vrot.slane %v1437_v42, 1 }
 0x2be   : > { %v374_v45 = vshrl.u32 %v1198_v41, 16  ;;  %v376_v46 = vshll.u32 %v1198_v41, 16 }
 0x2bf   : > { %v390_v49 = vrot.slane %v1200_v44, 1  ;;  %v383_v51 = vrot.slane %v381_v47, 1 }
 0x2c0   : > { %v378_v50 = vrot.slane %v376_v46, 1 }
 0x2c1   : > { %v392_v52 = vsel %vm389_vm14, %v390_v49, %v391_v48 }
 0x2c2   : > { %v379_v53 = vor.u32 %v378_v50, %v374_v45  ;;  %1348 = vmatmul.mubr.bf16.vlgmr.msra.gmra.mrb[0].mxu1 %v392_v52 }
 0x2c4   : > { %v384_v54 = vsel %vm372_vm15, %v379_v53, %v383_v51 }
 0x2c5   : > { %618 = vmatprep.mubr.bf16.mxu0 %v384_v54 }
 0x2c6   : > { %619 = vmatmul.mubr.bf16.vlgmr.msra.gmra.mrb[0].mxu0 %v1198_v41 }
 0x395   : > { %v661_v55 = vpop.f32.mrb[0].mxu1 }
 0x396   : > { %v1349_v56 = vpop.f32.mrb[1].mxu1 }
 0x397   : > { %v664_v57 = vpop.f32.mrb[2].mxu1 }
 0x398   : > { %v1350_v58 = vpop.f32.mrb[3].mxu1 }
 0x399   : > { %v1285_v59 = vpop.f32.mrb[0].mxu0 }
 0x39a   : > { %v1286_v60 = vpop.f32.mrb[1].mxu0 }
 0x39b   : > { %v1287_v61 = vadd.f32 %v1286_v60, %v1285_v59  ;;  %v1288_v62 = vpop.f32.mrb[2].mxu0 }
 0x39c   : > { %v1289_v63 = vpop.f32.mrb[3].mxu0 }
 0x39d   : > { %v662_v0 = vadd.f32 %v1287_v61, %v661_v55  ;;  %v1290_v1 = vadd.f32 %v1289_v63, %v1288_v62 }
 0x39f   : > { %670 = vst [vmem:[#allocation2] sm:$0xff] %v662_v0  ;;  %v665_v2 = vadd.f32 %v1290_v1, %v664_v57  ;;  %v683_v3 = vmul.f32 %v662_v0, %v662_v0 }
 0x3a1   : > { %671 = vst [vmem:[#allocation2 + $0x8] sm:$0xff] %v665_v2  ;;  %v673_v4 = vadd.f32 %v665_v2, %v662_v0  ;;  %v684_v5 = vmul.f32 %v665_v2, %v665_v2 }
 0x3a3   : > { %v674_v6 = vrot.slane %v673_v4, 4  ;;  %v685_v7 = vadd.f32 %v684_v5, %v683_v3 }
 0x3a5   : > { %v675_v8 = vadd.f32 %v674_v6, %v673_v4  ;;  %v686_v9 = vrot.slane %v685_v7, 4 }
 0x3a7   : > { %v676_v10 = vrot.slane %v675_v8, 2  ;;  %v687_v11 = vadd.f32 %v686_v9, %v685_v7 }
 0x3a9   : > { %v677_v12 = vadd.f32 %v676_v10, %v675_v8  ;;  %v688_v13 = vrot.slane %v687_v11, 2 }
 0x3ab   : > { %v678_v14 = vrot.slane %v677_v12, 1  ;;  %v689_v15 = vadd.f32 %v688_v13, %v687_v11 }
 0x3ad   : > { %v679_v17 = vadd.f32 %v678_v14, %v677_v12  ;;  %v690_v18 = vrot.slane %v689_v15, 1 }
 0x3af   : > { %v680_v20 = vadd.f32 %v679_v17, %v672_v16  ;;  %v691_v21 = vadd.f32 %v690_v18, %v689_v15 }
 0x3b1   : > { %681 = vst [vmem:[#allocation4] sm:$0x1] %v680_v20  ;;  %v692_v22 = vadd.f32 %v691_v21, %v682_v19 }
 0x3b3   : > { %693 = vst [vmem:[#allocation4 + $0x1] sm:$0x1] %v692_v22 }
 0x3b4 PF: > { %p694_p8 = scmp.eq.s32.totalorder %s1482_s15, 2 }
 0x3b5   : > { %s1500_s14 = smov (%p694_p8), 4   ;;  %s1501_s19 = smov (%p694_p8), 8   ;;  %v699_v41 = vld [vmem:[%s1761_s1 + $0x2] sm:$0x1] (%p694_p8)  ;;  %v700_v44 = vld [vmem:[%s1761_s1 + $0x3] sm:$0x1] (%p694_p8) }
 0x3b6   : > { %698 = sbr.rel (!%p694_p8) target bundleno = 1572 (0x624), region = 56  ;;  %s1502_s20 = smov (%p694_p8), 16  }
 0x3b7   : > { %s1503_s21 = smov (%p694_p8), 32   ;;  %s1504_s22 = smov (%p694_p8), 64  }
 0x3ba   : > { %v701_v23 = vld [vmem:[#allocation4] sm:$0x3] (%p694_p8) }
 0x3bb   : > { %702 = vrot.lane.b32.xlu0 (%p694_p8), %v701_v23, %s1500_s14 }
 0x42d   : > { %v703_v24 = vpop.permute.xlu0 %702 }
 0x42e   : > { %v704_v25 = vadd.f32 %v703_v24, %v701_v23 }
 0x430   : > { %705 = vrot.lane.b32.xlu0 %v704_v25, %s1501_s19 }
 0x4a2   : > { %v706_v26 = vpop.permute.xlu0 %705 }
 0x4a3   : > { %v707_v27 = vadd.f32 %v706_v26, %v704_v25 }
 0x4a5   : > { %708 = vrot.lane.b32.xlu1 %v707_v27, %s1502_s20 }
 0x517   : > { %v709_v28 = vpop.permute.xlu1 %708 }
 0x518   : > { %v710_v29 = vadd.f32 %v709_v28, %v707_v27 }
 0x51a   : > { %711 = vrot.lane.b32.xlu1 %v710_v29, %s1503_s21 }
 0x58c   : > { %v712_v30 = vpop.permute.xlu1 %711 }
 0x58d   : > { %v713_v31 = vadd.f32 %v712_v30, %v710_v29 }
 0x58f   : > { %714 = vrot.lane.b32.xlu0 %v713_v31, %s1504_s22 }
 0x601   : > { %v715_v32 = vpop.permute.xlu0 %714 }
 0x602   : > { %v716_v33 = vadd.f32 %v715_v32, %v713_v31 }
 0x604   : > { %v717_v34 = vmul.f32 0.001953125, %v716_v33 }
 0x606   : > { %v718_v35 = vmul.f32 %v717_v34, %v717_v34 }
 0x608   : > { %v720_v36 = vrot.slane %v718_v35, 7 }
 0x60a   : > { %v722_v37 = vsub.f32 %v717_v34, %v720_v36 }
 0x60c   : > { %v723_v38 = vmax.f32 %v722_v37, 0.0 }
 0x60e   : > { %v724_v39 = vadd.f32 1e-05, %v723_v38 }
 0x610   : > { %1439 = vrsqrt.f32 %v724_v39 }
 0x61a   : > { %v1440_v40 = vpop.eup %1439 }
 0x61b   : > { %v727_v42 = vrot.slane %v1440_v40, 1 }
 0x61d   : > { %v729_v43 = vmul.f32 %v727_v42, %v699_v41 }
 0x61f   : > { %730 = vst [vmem:[#allocation4 + $0x2] sm:$0x1] %v729_v43  ;;  %v731_v45 = vmul.f32 %v729_v43, %v717_v34 }
 0x621   : > { %v732_v46 = vsub.f32 %v700_v44, %v731_v45 }
 0x623   : > { %733 = vst [vmem:[#allocation4 + $0x3] sm:$0x1] %v732_v46 }
 0x624 PF: > { %p1226_p9 = scmp.ne.s32.totalorder %s1482_s15, 2 }
 0x625   : > { %v1441_v47 = vld [vmem:[%s1763_s3 + $0x40] sm:$0xff] (!%p1226_p9)   ;;  %v1505_v49 = vmov (!%p1226_p9), 0.0   ;;  %v1444_v51 = vld [vmem:[%s1763_s3 + $0x48] sm:$0xff] (!%p1226_p9)   ;;  %vm1506_vm0 = vmmov (!%p1226_p9), 0   ;;  %v1447_v54 = vld [vmem:[%s1763_s3 + $0x50] sm:$0xff] (!%p1226_p9)   ;;  %vm786_vm1 = vcmask (!%p1226_p9), 1043456  }
 0x626   : > { %736 = sbr.rel (%p1226_p9) target bundleno = 1839 (0x72f), region = 60  ;;  %v1442_v48 = vld [vmem:[%s1763_s3] sm:$0xff] (!%p1226_p9)   ;;  %1351 = vmatprep.subr.bf16.mxu1 (!%p1226_p9), %v1505_v49  ;;  %1300 = vmatprep.subr.bf16.mxu0 (!%p1226_p9), %v1441_v47  ;;  %v1445_v52 = vld [vmem:[%s1763_s3 + $0x8] sm:$0xff] (!%p1226_p9)   ;;  %v1448_v55 = vld [vmem:[%s1763_s3 + $0x10] sm:$0xff] (!%p1226_p9)   ;;  %vm793_vm2 = vcmask (!%p1226_p9), 1040384   ;;  %vm828_vm9 = vcmask (!%p1226_p9), 1046528  }
 0x627   : > { %v1443_v50 = vld [vmem:[%s1763_s3 + $0x80] sm:$0xff] (!%p1226_p9)   ;;  %1301 = vmatpush3.bf16.msra.mxu0 (!%p1226_p9), %v1442_v48  ;;  %1367 = vmatprep.mubr.msk.bf16.mxu1 (!%p1226_p9), %vm1506_vm0, %v1505_v49  ;;  %v1446_v53 = vld [vmem:[%s1763_s3 + $0x88] sm:$0xff] (!%p1226_p9)   ;;  %v1449_v56 = vld [vmem:[%s1763_s3 + $0x90] sm:$0xff] (!%p1226_p9)   ;;  %vm763_vm3 = vsmask.f32 (!%p1226_p9), 256 }
 0x628   : > { %1352 = vmatpush3.bf16.msra.mxu1 (!%p1226_p9), %v1443_v50  ;;  %1302 = vmatprep.subr.bf16.mxu0 (!%p1226_p9), %v1444_v51  ;;  %v1450_v57 = vld [vmem:[%s1763_s3 + $0x58] sm:$0xff] (!%p1226_p9)   ;;  %v1453_v60 = vld [vmem:[%s1763_s3 + $0x60] sm:$0xff] (!%p1226_p9)   ;;  %v1456_v63 = vld [vmem:[%s1763_s3 + $0x68] sm:$0xff] (!%p1226_p9)   ;;  %vm764_vm4 = vsmask.f32 (!%p1226_p9), 4368 }
 0x629   : > { %1353 = vmatprep.subr.bf16.mxu1 (!%p1226_p9), %v1505_v49  ;;  %v1451_v58 = vld [vmem:[%s1763_s3 + $0x18] sm:$0xff] (!%p1226_p9)   ;;  %v1454_v61 = vld [vmem:[%s1763_s3 + $0x20] sm:$0xff] (!%p1226_p9)   ;;  %v1457_v0 = vld [vmem:[%s1763_s3 + $0x28] sm:$0xff] (!%p1226_p9)   ;;  %vm787_vm5 = vsmask.f32 (!%p1226_p9), 7938 }
 0x62a   : > { %v1452_v59 = vld [vmem:[%s1763_s3 + $0x98] sm:$0xff] (!%p1226_p9)   ;;  %v1455_v62 = vld [vmem:[%s1763_s3 + $0xa0] sm:$0xff] (!%p1226_p9)   ;;  %v1458_v1 = vld [vmem:[%s1763_s3 + $0xa8] sm:$0xff] (!%p1226_p9)   ;;  %vm811_vm10 = vsmask.f32 (!%p1226_p9), 7424 }
 0x62b   : > { %1303 = vmatpush3.bf16.msra.mxu0 (!%p1226_p9), %v1445_v52  ;;  %v1459_v2 = vld [vmem:[%s1763_s3 + $0x70] sm:$0xff] (!%p1226_p9)   ;;  %v739_v4 = vld [vmem:[#allocation2] sm:$0xff] (!%p1226_p9)  ;;  %v740_v5 = vld [vmem:[#allocation2 + $0x8] sm:$0xff] (!%p1226_p9) }
 0x62c   : > { %1354 = vmatpush3.bf16.msra.mxu1 (!%p1226_p9), %v1446_v53  ;;  %1304 = vmatprep.subr.bf16.mxu0 (!%p1226_p9), %v1447_v54  ;;  %v1460_v3 = vld [vmem:[%s1763_s3 + $0x30] sm:$0xff] (!%p1226_p9)   ;;  %v1462_v8 = vld [vmem:[%s1763_s3 + $0x78] sm:$0xff] (!%p1226_p9)   ;;  %vm794_vm6 = vmand (!%p1226_p9), %vm793_vm2, %vm763_vm3 }
 0x62d   : > { %1355 = vmatprep.subr.bf16.mxu1 %v1505_v49  ;;  %v1227_v6 = vld [vmem:[#allocation4 + $0x2] ss:$0 sm:$0xff]  ;;  %v1228_v11 = vld [vmem:[#allocation4 + $0x3] ss:$0 sm:$0xff]  ;;  %v1463_v14 = vld [vmem:[%s1763_s3 + $0x38] sm:$0xff]  }
 0x62e   : > { %v1461_v7 = vld [vmem:[%s1763_s3 + $0xb0] sm:$0xff]   ;;  %v746_v9 = vmul.f32 %v1227_v6, %v739_v4  ;;  %v747_v10 = vmul.f32 %v1227_v6, %v740_v5  ;;  %v1466_v17 = vld [vmem:[%s1763_s3 + $0xb8] sm:$0xff]   ;;  %vm765_vm7 = vmor %vm763_vm3, %vm764_vm4 }
 0x62f   : > { %1305 = vmatpush3.bf16.msra.mxu0 %v1448_v55  ;;  %vm788_vm8 = vmand %vm786_vm1, %vm787_vm5  ;;  %v789_v26 = vld [vmem:[#allocation5] sm:$0xf]  ;;  %v795_v27 = vld [vmem:[#allocation5 + $0x8] sm:$0x1] }
 0x630   : > { %1356 = vmatpush3.bf16.msra.mxu1 %v1449_v56  ;;  %1306 = vmatprep.subr.bf16.mxu0 %v1450_v57  ;;  %v753_v12 = vadd.f32 %v1228_v11, %v746_v9  ;;  %v754_v13 = vadd.f32 %v1228_v11, %v747_v10  ;;  %v1234_v57 = vld [vmem:[%s1761_s1 + $0x4] ss:$0 sm:$0xff] }
 0x631   : > { %1357 = vmatprep.subr.bf16.mxu1 %v1505_v49 }
 0x632   : > { %v755_v15 = vmax.f32 %v753_v12, 0.0  ;;  %v756_v16 = vmax.f32 %v754_v13, 0.0 }
 0x633   : > { %1307 = vmatpush3.bf16.msra.mxu0 %v1451_v58 }
 0x634   : > { %1358 = vmatpush3.bf16.msra.mxu1 %v1452_v59  ;;  %1308 = vmatprep.subr.bf16.mxu0 %v1453_v60  ;;  %v1267_v18 = vpack.c.bf16 %v755_v15, %v755_v15  ;;  %v1268_v19 = vpack.c.bf16 %v756_v16, %v756_v16 }
 0x635   : > { %1359 = vmatprep.subr.bf16.mxu1 %v1505_v49 }
 0x636   : > { %v767_v20 = vshrl.u32 %v1267_v18, 16  ;;  %v770_v21 = vshll.u32 %v1267_v18, 16  ;;  %v775_v22 = vshrl.u32 %v1268_v19, 16  ;;  %v778_v23 = vshll.u32 %v1268_v19, 16 }
 0x637   : > { %1309 = vmatpush3.bf16.msra.mxu0 %v1454_v61 }
 0x638   : > { %1360 = vmatpush3.bf16.msra.mxu1 %v1455_v62  ;;  %1310 = vmatprep.subr.bf16.mxu0 %v1456_v63  ;;  %v769_v24 = vrot.slane %v767_v20, 7  ;;  %v777_v25 = vrot.slane %v775_v22, 7  ;;  %v1112_v63 = vld [vmem:[%s1760_s0] sm:$0xff] }
 0x639   : > { %1361 = vmatprep.subr.bf16.mxu1 %v1505_v49 }
 0x63a   : > { %v772_v28 = vor.u32 %v770_v21, %v769_v24  ;;  %v773_v29 = vrot.slane %v769_v24, 4  ;;  %v780_v30 = vor.u32 %v778_v23, %v777_v25  ;;  %v782_v31 = vrot.slane %v777_v25, 4 }
 0x63b   : > { %1311 = vmatpush3.bf16.msra.mxu0 %v1457_v0 }
 0x63c   : > { %1362 = vmatpush3.bf16.msra.mxu1 %v1458_v1  ;;  %1312 = vmatprep.subr.bf16.mxu0 %v1459_v2  ;;  %v781_v32 = vsel %vm765_vm7, %v773_v29, %v780_v30  ;;  %v790_v33 = vsel %vm788_vm8, %v772_v28, %v789_v26  ;;  %v796_v34 = vsel %vm794_vm6, %v782_v31, %v795_v27  ;;  %v1113_v2 = vld [vmem:[%s1760_s0 + $0x8] sm:$0xff] }
 0x63d   : > { %1363 = vmatprep.subr.bf16.mxu1 %v1505_v49  ;;  %791 = vst [vmem:[#allocation5] sm:$0xf] %v790_v33  ;;  %792 = vst [vmem:[#allocation5 + $0x4] sm:$0xf] %v781_v32 }
 0x63e   : > { %797 = vst [vmem:[#allocation5 + $0x8] sm:$0x1] %v796_v34 }
 0x63f   : > { %1313 = vmatpush3.bf16.msra.mxu0 %v1460_v3 }
 0x640   : > { %1364 = vmatpush3.bf16.msra.mxu1 %v1461_v7  ;;  %1314 = vmatprep.subr.bf16.mxu0 %v1462_v8 }
 0x641   : > { %1365 = vmatprep.subr.bf16.mxu1 %v1505_v49 }
 0x643   : > { %1315 = vmatpush3.bf16.msra.mxu0 %v1463_v14 }
 0x644   : > { %1366 = vmatpush3.bf16.msra.mxu1 %v1466_v17  ;;  %v798_v35 = vld [vmem:[#allocation5] sm:$0xf]  ;;  %v799_v36 = vld [vmem:[#allocation5 + $0x4] sm:$0xf] }
 0x645   : > { %v1231_v37 = vcombine.low %v798_v35, %v799_v36  ;;  %v1465_v38 = vld [vmem:[#allocation5 + $0x8] ss:$0 sps:$4 sm:$0x11]   ;;  %v801_v39 = vld [vmem:[#allocation5] sm:$0xe] }
 0x646   : > { %v1233_v40 = vcombine.low %v801_v39, %v799_v36  ;;  %v820_v43 = vshll.u32 %v1465_v38, 16  ;;  %v830_v44 = vrot.slane %v1465_v38, 1 }
 0x647   : > { %v813_v41 = vshrl.u32 %v1231_v37, 16  ;;  %v815_v42 = vshll.u32 %v1231_v37, 16 }
 0x648   : > { %v829_v45 = vrot.slane %v1233_v40, 1  ;;  %v822_v47 = vrot.slane %v820_v43, 1 }
 0x649   : > { %v817_v46 = vrot.slane %v815_v42, 1 }
 0x64a   : > { %v831_v48 = vsel %vm828_vm9, %v829_v45, %v830_v44 }
 0x64b   : > { %v818_v49 = vor.u32 %v817_v46, %v813_v41  ;;  %1368 = vmatmul.mubr.bf16.vlgmr.msra.gmra.mrb[0].mxu1 %v831_v48 }
 0x64d   : > { %v823_v50 = vsel %vm811_vm10, %v818_v49, %v822_v47 }
 0x64e   : > { %1062 = vmatprep.mubr.bf16.mxu0 %v823_v50 }
 0x64f   : > { %1063 = vmatmul.mubr.bf16.vlgmr.msra.gmra.mrb[0].mxu0 %v1231_v37 }
 0x71e   : > { %v1105_v51 = vpop.f32.mrb[0].mxu1 }
 0x71f   : > { %v1369_v52 = vpop.f32.mrb[1].mxu1 }
 0x720   : > { %v1108_v53 = vpop.f32.mrb[2].mxu1 }
 0x721   : > { %v1370_v54 = vpop.f32.mrb[3].mxu1 }
 0x722   : > { %v1316_v55 = vpop.f32.mrb[0].mxu0 }
 0x723   : > { %v1317_v56 = vpop.f32.mrb[1].mxu0 }
 0x724   : > { %v1318_v58 = vadd.f32 %v1317_v56, %v1316_v55  ;;  %v1319_v59 = vpop.f32.mrb[2].mxu0 }
 0x725   : > { %v1320_v60 = vpop.f32.mrb[3].mxu0 }
 0x726   : > { %v1065_v61 = vadd.f32 %v1318_v58, %v1234_v57  ;;  %v1321_v62 = vadd.f32 %v1320_v60, %v1319_v59 }
 0x728   : > { %v1106_v0 = vadd.f32 %v1105_v51, %v1065_v61  ;;  %v1068_v1 = vadd.f32 %v1321_v62, %v1234_v57 }
 0x72a   : > { %v1114_v3 = vadd.f32 %v1112_v63, %v1106_v0  ;;  %v1109_v4 = vadd.f32 %v1108_v53, %v1068_v1 }
 0x72c   : > { %1116 = vst [vmem:[%s1764_s4] sm:$0xff] %v1114_v3  ;;  %v1115_v5 = vadd.f32 %v1113_v2, %v1109_v4 }
 0x72e   : > { %1117 = vst [vmem:[%s1764_s4 + $0x8] sm:$0xff] %v1115_v5 }
 0x72f PF: > { %s14_s17 = sadd.s32 1, %s1490_s17   ;;  %s1765_s15 = smov %s1486_s16 }
 0x730   : > { %p11_p10 = scmp.ge.s32.totalorder %s14_s17, 5   ;;  %s1766_s16 = smov %s1768_s18 }
 0x732   :  { %13 = sbr.rel (!%p11_p10) target bundleno = 2 (0x2), region = 92 }

</bundles_post_ra>
